<compile_context>
chip_gen: v6e
topology: v6e:2x2x1
jax: 0.10.0
libtpu: 0.0.40
codegen_flags: <defaults>
</compile_context>

<pallas_src>
import functools

import jax
import jax.numpy as jnp
from jax.experimental import pallas as pl
from jax.experimental.pallas import tpu as pltpu

LEAKY_SLOPE = 0.01   # nn.LeakyReLU default negative_slope
BN_EPS = 1e-5        # nn.BatchNorm1d default eps
TCN_CHANNELS = [64, 128, 128, 12]   # TemporalConvNet(num_inputs=12, num_channels=...)
_HI = jax.lax.Precision.HIGHEST


# ----------------------------------------------------------------------------
# Shared math body, used by BOTH the Pallas kernel and the pure-JAX emulation
# check.  getW(i)/getB(i) fetch weight/bias entry i; shift(a, d) is the
# per-batch dilated causal shift on the stacked (B*T, C) slab.
# ----------------------------------------------------------------------------
def _forward_math(h, getW, getB, shift, blocks, head):
    dot = functools.partial(jnp.dot, preferred_element_type=jnp.float32)
    bf16 = jnp.bfloat16

    def conv(inp, inp_sh, cm):
        if cm["cat"]:
            # merged form: single MXU dot with K = 2 * width (lane concat is aligned)
            lhs = jnp.concatenate([inp, inp_sh], axis=1).astype(bf16)
            return dot(lhs, getW(cm["w"]))
        # split form (width == 12): two tiny dots, no unaligned lane concat
        return dot(inp.astype(bf16), getW(cm["wt"])) + dot(inp_sh.astype(bf16), getW(cm["wb"]))

    for blk in blocks:
        d, cout = blk["d"], blk["cout"]
        h_sh = shift(h, d)
        z = conv(h, h_sh, blk["conv1"]) + getB(blk["conv1"]["b"])
        if blk["res"] == "fused":            # residual 1x1 projection fused into conv1's N
            c1 = jnp.maximum(z[:, :cout], 0.0)
            res = z[:, cout:]
        else:
            c1 = jnp.maximum(z, 0.0)
            if blk["res"] == "identity":
                res = h
            else:                             # separate 1x1 downsample conv
                res = dot(h.astype(bf16), getW(blk["wds"])) + getB(blk["bds"])
        # TODO(synk): Dropout inside TemporalBlock is identity (eval mode).
        c2 = jnp.maximum(conv(c1, shift(c1, d), blk["conv2"]) + getB(blk["conv2"]["b"]), 0.0)
        h = jnp.maximum(c2 + res, 0.0)

    # head: (per-batch gcn matmul + Linear1) folded into one block-diag matmul,
    # then LeakyReLU -> BatchNorm(eval, folded scale/shift) -> Dropout(id) -> Linear2.
    z = dot(getW(head["bd1"]), h.astype(bf16)) + getB(head["b1col"])
    z = jnp.where(z > 0, z, LEAKY_SLOPE * z)
    z = z * getB(head["bn_scale"]) + getB(head["bn_shift"])
    # TODO(synk): Dropout(p=0.5) in block_out is identity in eval mode.
    return dot(getW(head["bd2"]), z.astype(bf16)) + getB(head["b2col"])


# ----------------------------------------------------------------------------
# Wrapper-side weight preparation (depends only on adj/params -> cacheable).
# ----------------------------------------------------------------------------
def _prepare(x, adj, params):
    B, L, T = x.shape
    x_stacked = jnp.transpose(x, (0, 2, 1)).reshape(B * T, L).astype(jnp.float32)
    adj_t = adj.T

    w_list, b_list = [], []

    def add_w(a):
        w_list.append(a.astype(jnp.bfloat16))
        return len(w_list) - 1

    def add_b(a):
        b_list.append(a.astype(jnp.float32))
        return len(b_list) - 1

    def conv_meta(w_cur, w_prev, bias, lhs_width):
        # merged single-dot form only when the in-kernel lane concat is 64-aligned
        if lhs_width % 64 == 0:
            return dict(cat=True,
                        w=add_w(jnp.concatenate([w_cur, w_prev], axis=0)),
                        b=add_b(bias))
        return dict(cat=False, wt=add_w(w_cur), wb=add_w(w_prev), b=add_b(bias))

    blocks = []
    for i, blk in enumerate(params["tcn"]):
        d = 2 ** i
        w1a, w1b = blk["w1a_t"], blk["w1b_t"]      # (cin, cout): tap on x[t-d] / x[t]
        w2a, w2b = blk["w2a_t"], blk["w2b_t"]      # (cout, cout)
        b1, b2 = blk["b1"], blk["b2"]              # (1, cout)
        wds, bds = blk["wds_t"], blk["bds"]
        cin, cout = w1b.shape

        if i == 0:
            # Fold the graph matmul (adj @ x) into block-0's weights: the causal
            # shift acts on T, adj acts on L, so the two commute.
            w1b = jnp.dot(adj_t, w1b, precision=_HI)
            w1a = jnp.dot(adj_t, w1a, precision=_HI)
            if wds is not None:
                wds = jnp.dot(adj_t, wds, precision=_HI)

        fuse_res = wds is not None and cin % 64 == 0 and cout % 64 == 0
        if fuse_res:
            w_cur1 = jnp.concatenate([w1b, wds], axis=1)                    # (cin, 2cout)
            w_prev1 = jnp.concatenate([w1a, jnp.zeros_like(wds)], axis=1)   # (cin, 2cout)
            b1row = jnp.concatenate([b1, bds], axis=1)                      # (1, 2cout)
        else:
            w_cur1, w_prev1, b1row = w1b, w1a, b1

        conv1 = conv_meta(w_cur1, w_prev1, b1row, cin)
        conv2 = conv_meta(w2b, w2a, b2, cout)

        if fuse_res:
            res_mode, wds_i, bds_i = "fused", None, None
        elif wds is None:
            res_mode, wds_i, bds_i = "identity", None, None
        else:
            res_mode, wds_i, bds_i = "separate", add_w(wds), add_b(bds)

        blocks.append(dict(d=d, cout=cout, res=res_mode, conv1=conv1, conv2=conv2,
                           wds=wds_i, bds=bds_i))

    # Head: fold per-batch gcn weight with Linear1 and build block-diagonal
    # (B*T, B*T) matrices so the whole batch is one matmul each.
    gw = params["gcn_weight"]                       # (B, T, T)
    lin1_w, lin1_b = params["lin1_w"], params["lin1_b"]
    lin2_w, lin2_b = params["lin2_w"], params["lin2_b"]
    fold = jnp.einsum("ts,bus->btu", lin1_w, gw, precision=_HI)   # fold[b] = lin1_w @ gw[b].T
    BT = B * T
    bd1 = jnp.zeros((BT, BT), jnp.float32)
    bd2 = jnp.zeros((BT, BT), jnp.float32)
    for b in range(B):
        bd1 = bd1.at[b * T:(b + 1) * T, b * T:(b + 1) * T].set(fold[b])
        bd2 = bd2.at[b * T:(b + 1) * T, b * T:(b + 1) * T].set(lin2_w)

    bn_scale = (params["bn_gamma"] / jnp.sqrt(params["bn_var"] + BN_EPS)).reshape(1, L)
    bn_shift = (params["bn_beta"] - params["bn_mean"] * bn_scale[0]).reshape(1, L)

    head = dict(bd1=add_w(bd1),
                b1col=add_b(jnp.tile(lin1_b, B).reshape(BT, 1)),
                bn_scale=add_b(bn_scale), bn_shift=add_b(bn_shift),
                bd2=add_w(bd2),
                b2col=add_b(jnp.tile(lin2_b, B).reshape(BT, 1)))
    return x_stacked, w_list, b_list, tuple(blocks), head


def _pack_slab(arrs, row_align):
    """Pack 2-D arrays row-wise into one padded slab (single DMA) + static offsets."""
    width = max((-(-a.shape[1] // 128)) * 128 for a in arrs)
    pieces, offs, row = [], [], 0
    for a in arrs:
        r, c = a.shape
        pad_r = (-r) % row_align
        pieces.append(jnp.pad(a, ((0, pad_r), (0, width - c))))
        offs.append((row, r, c))
        row += r + pad_r
    return jnp.concatenate(pieces, axis=0), tuple(offs)


# ----------------------------------------------------------------------------
# The fused Pallas kernel (gridless, everything resident in VMEM).
# ----------------------------------------------------------------------------
def _make_kernel(T, blocks, head, w_offs, b_offs):
    def kernel(x_ref, w_ref, b_ref, o_ref):
        def getW(i):
            o, r, c = w_offs[i]
            return w_ref[o:o + r, :c]          # static slice at point of use

        def getB(i):
            o, r, c = b_offs[i]
            return b_ref[o:o + r, :c]

        def shift(a, d):
            # Per-batch dilated causal shift on the stacked (B*T, C) slab:
            # rows that roll across a batch boundary are exactly the rows the
            # causal padding zeroes, so one roll + (t mod T) >= d mask is exact.
            rolled = pltpu.roll(a, shift=d, axis=0)
            t = jax.lax.broadcasted_iota(jnp.int32, a.shape, 0) % T
            return jnp.where(t >= d, rolled, 0.0)

        o_ref[...] = _forward_math(x_ref[...], getW, getB, shift, blocks, head)

    return kernel


def stock_block_layer(x, adj, params):
    """x: (B, L, T), adj: (L, L) -> (B, L, T).  Matches PyTorch StockBlockLayer (eval)."""
    B, L, T = x.shape
    xs, w_list, b_list, blocks, head = _prepare(x, adj, params)
    # Two slabs -> only two weight DMAs (instead of ~30 tiny ones).
    wslab, w_offs = _pack_slab(w_list, row_align=16)   # bf16: 16 rows / vreg tile
    bslab, b_offs = _pack_slab(b_list, row_align=8)    # f32 :  8 rows / vreg tile

    out = pl.pallas_call(
        _make_kernel(T, blocks, head, w_offs, b_offs),
        out_shape=jax.ShapeDtypeStruct((B * T, L), jnp.float32),
        in_specs=[pl.BlockSpec(memory_space=pltpu.MemorySpace.VMEM)] * 3,
        out_specs=pl.BlockSpec(memory_space=pltpu.MemorySpace.VMEM),
    )(xs, wslab, bslab)
    return out.reshape(B, T, L).transpose(0, 2, 1)


def stock_block_layer_emulated(x, adj, params):
    """Pure-JAX run of the SAME prepared weights / math (ground-truth per-batch
    shift) -- validates the Pallas plumbing (slab packing, roll+mask) tightly."""
    B, L, T = x.shape
    xs, w_list, b_list, blocks, head = _prepare(x, adj, params)

    def shift(a, d):
        a3 = a.reshape(B, T, a.shape[-1])
        return jnp.pad(a3, ((0, 0), (d, 0), (0, 0)))[:, :T, :].reshape(B * T, a.shape[-1])

    out = _forward_math(xs, lambda i: w_list[i], lambda i: b_list[i], shift, blocks, head)
    return out.reshape(B, T, L).transpose(0, 2, 1)


# ----------------------------------------------------------------------------
# Deterministic parameter construction (shapes follow the PyTorch __init__).
# Conv/Linear weights are stored pre-transposed to (in, out) for the (T, C) layout.
# ----------------------------------------------------------------------------
def _xavier(key, shape, fan_in, fan_out):
    bound = (6.0 / (fan_in + fan_out)) ** 0.5
    return jax.random.uniform(key, shape, jnp.float32, -bound, bound)


def init_params(key, B, L, T):
    keys = iter(jax.random.split(key, 64))
    params = {}

    # nn.Parameter(batch_size, step_len, step_len), xavier_uniform
    params["gcn_weight"] = _xavier(next(keys), (B, T, T), T, T)

    # TemporalConvNet(num_inputs=12, num_channels=[64, 128, 128, 12], kernel=2)
    channels = [L] + TCN_CHANNELS
    tcn = []
    for i in range(4):
        cin, cout = channels[i], channels[i + 1]
        w1 = _xavier(next(keys), (cout, cin, 2), cin * 2, cout)
        w2 = _xavier(next(keys), (cout, cout, 2), cout * 2, cout)
        blk = {
            # tap 0 multiplies x[t-d] (shifted), tap 1 multiplies x[t] (current)
            "w1a_t": w1[:, :, 0].T, "w1b_t": w1[:, :, 1].T,
            "b1": _xavier(next(keys), (1, cout), cin * 2, cout),
            "w2a_t": w2[:, :, 0].T, "w2b_t": w2[:, :, 1].T,
            "b2": _xavier(next(keys), (1, cout), cout * 2, cout),
        }
        if cin != cout:   # downsample 1x1 conv
            blk["wds_t"] = _xavier(next(keys), (cout, cin), cin, cout).T
            blk["bds"] = _xavier(next(keys), (1, cout), cin, cout)
        else:             # identity residual -> no weights at all
            blk["wds_t"] = None
            blk["bds"] = None
        tcn.append(blk)
    params["tcn"] = tcn

    # block_out: Linear(T,T) -> LeakyReLU -> BatchNorm1d(leads) -> Dropout -> Linear(T,T)
    params["lin1_w"] = _xavier(next(keys), (T, T), T, T)   # PyTorch layout (out, in)
    params["lin1_b"] = _xavier(next(keys), (T,), T, T)
    params["lin2_w"] = _xavier(next(keys), (T, T), T, T)
    params["lin2_b"] = _xavier(next(keys), (T,), T, T)
    params["bn_gamma"] = jnp.ones((L,), jnp.float32)
    params["bn_beta"] = jnp.zeros((L,), jnp.float32)
    params["bn_mean"] = jnp.zeros((L,), jnp.float32)
    params["bn_var"] = jnp.ones((L,), jnp.float32)
    return params


# ----------------------------------------------------------------------------
# Pure-JAX f32 reference mirroring the PyTorch forward (eval mode) structurally
# (no weight folding / tap merging) -- validates overall semantics.
# ----------------------------------------------------------------------------
def reference_forward(x, adj, params):
    hi = jax.lax.Precision.HIGHEST
    B, L, T = x.shape
    h = jnp.einsum("ij,bjt->bit", adj, x, precision=hi)
    for i, blk in enumerate(params["tcn"]):
        d = 2 ** i

        def shift(a, d=d):
            return jnp.pad(a, ((0, 0), (0, 0), (d, 0)))[:, :, :T]

        w1a, w1b = blk["w1a_t"].T, blk["w1b_t"].T
        w2a, w2b = blk["w2a_t"].T, blk["w2b_t"].T
        b1, b2 = blk["b1"][0], blk["b2"][0]
        c1 = (jnp.einsum("oi,bit->bot", w1b, h, precision=hi)
              + jnp.einsum("oi,bit->bot", w1a, shift(h), precision=hi)
              + b1[None, :, None])
        c1 = jnp.maximum(c1, 0.0)
        c2 = (jnp.einsum("oi,bit->bot", w2b, c1, precision=hi)
              + jnp.einsum("oi,bit->bot", w2a, shift(c1), precision=hi)
              + b2[None, :, None])
        c2 = jnp.maximum(c2, 0.0)
        if blk["wds_t"] is not None:
            res = (jnp.einsum("oi,bit->bot", blk["wds_t"].T, h, precision=hi)
                   + blk["bds"][0][None, :, None])
        else:
            res = h
        h = jnp.maximum(c2 + res, 0.0)
    g = jnp.einsum("blt,bts->bls", h, params["gcn_weight"], precision=hi)
    z = jnp.einsum("blt,st->bls", g, params["lin1_w"], precision=hi) + params["lin1_b"][None, None, :]
    z = jnp.where(z > 0, z, LEAKY_SLOPE * z)
    scale = params["bn_gamma"] / jnp.sqrt(params["bn_var"] + BN_EPS)
    off = params["bn_beta"] - params["bn_mean"] * scale
    z = z * scale[None, :, None] + off[None, :, None]
    return jnp.einsum("bls,us->blu", z, params["lin2_w"], precision=hi) + params["lin2_b"][None, None, :]


if __name__ == "__main__":
    B, L, T = 2, 12, 16   # batch, leads (fixed to 12 by TCN num_inputs), step_len
    key = jax.random.PRNGKey(0)
    kx, ka, kp = jax.random.split(key, 3)
    x = jax.random.normal(kx, (B, L, T), jnp.float32)
    adj = jax.random.normal(ka, (L, L), jnp.float32)
    params = init_params(kp, B, L, T)

    fwd = jax.jit(stock_block_layer)
    out = jax.block_until_ready(fwd(x, adj, params))

    assert out.shape == (B, L, T) and out.dtype == jnp.float32
    assert bool(jnp.all(jnp.isfinite(out)))

    # Tight structural check: kernel vs pure-JAX run of the identical prepared
    # weights/math (catches packing-offset / roll / layout bugs).
    emu = jax.jit(stock_block_layer_emulated)(x, adj, params)
    rel_emu = float(jnp.max(jnp.abs(out - emu)) / (jnp.max(jnp.abs(emu)) + 1e-6))
    assert rel_emu < 3e-3, f"kernel vs bf16 emulation mismatch: rel={rel_emu:.3e}"

    # Semantic check vs the f32 PyTorch-structured reference (tolerance set by the
    # intentional bf16 matmul inputs).
    ref = reference_forward(x, adj, params)
    rel = float(jnp.max(jnp.abs(out - ref)) / (jnp.max(jnp.abs(ref)) + 1e-6))
    assert rel < 2.5e-2, f"kernel vs f32 reference mismatch: rel={rel:.3e}"

    print("KERNEL_OK")
</pallas_src>

<mosaic_0001>
module attributes {stable_mosaic.version = 11 : i64} {
  func.func @kernel(%arg0: memref<32x12xf32, #tpu.memory_space<vmem>>, %arg1: memref<1552x256xbf16, #tpu.memory_space<vmem>>, %arg2: memref<160x256xf32, #tpu.memory_space<vmem>>, %arg3: memref<32x12xf32, #tpu.memory_space<vmem>>) attributes {dimension_semantics = [], scalar_prefetch = 0 : i64, scratch_operands = 0 : i64, tpu.core_type = #tpu.core_type<tc>} {
    %c0 = arith.constant 0 : index
    %c0_0 = arith.constant 0 : index
    %0 = vector.load %arg0[%c0, %c0_0] : memref<32x12xf32, #tpu.memory_space<vmem>>, vector<32x12xf32>
    %c1_i32 = arith.constant 1 : i32
    %1 = tpu.dynamic_rotate %0 by %c1_i32 dim 0 : vector<32x12xf32>, i32 -> vector<32x12xf32>
    %2 = tpu.iota {dimensions = array<i32: 0>} : vector<32x12xi32>
    %c16_i32 = arith.constant 16 : i32
    %c0_i32 = arith.constant 0 : i32
    %3 = arith.cmpi eq, %c16_i32, %c0_i32 : i32
    %c1_i32_1 = arith.constant 1 : i32
    %4 = arith.select %3, %c1_i32_1, %c16_i32 : i32
    %5 = vector.broadcast %4 : i32 to vector<32x12xi32>
    %6 = arith.remsi %2, %5 : vector<32x12xi32>
    %c0_i32_2 = arith.constant 0 : i32
    %7 = vector.broadcast %c0_i32_2 : i32 to vector<32x12xi32>
    %8 = arith.cmpi ne, %6, %7 : vector<32x12xi32>
    %c0_i32_3 = arith.constant 0 : i32
    %9 = vector.broadcast %c0_i32_3 : i32 to vector<32x12xi32>
    %10 = arith.cmpi slt, %6, %9 : vector<32x12xi32>
    %c0_i32_4 = arith.constant 0 : i32
    %11 = arith.cmpi slt, %4, %c0_i32_4 : i32
    %12 = vector.broadcast %11 : i1 to vector<32x12xi1>
    %13 = vector.broadcast %12 : vector<32x12xi1> to vector<32x12xi1>
    %14 = arith.xori %10, %13 : vector<32x12xi1>
    %15 = arith.andi %14, %8 : vector<32x12xi1>
    %16 = vector.broadcast %4 : i32 to vector<32x12xi32>
    %17 = arith.addi %6, %16 : vector<32x12xi32>
    %18 = arith.select %15, %17, %6 : vector<32x12xi1>, vector<32x12xi32>
    %c1_i32_5 = arith.constant 1 : i32
    %19 = vector.broadcast %c1_i32_5 : i32 to vector<32x12xi32>
    %20 = arith.cmpi sge, %18, %19 : vector<32x12xi32>
    %cst = arith.constant 0.000000e+00 : f32
    %21 = vector.broadcast %cst : f32 to vector<32x12xf32>
    %22 = arith.select %20, %1, %21 : vector<32x12xi1>, vector<32x12xf32>
    %23 = arith.truncf %0 : vector<32x12xf32> to vector<32x12xbf16>
    %c0_6 = arith.constant 0 : index
    %c0_7 = arith.constant 0 : index
    %24 = vector.load %arg1[%c0_6, %c0_7] : memref<1552x256xbf16, #tpu.memory_space<vmem>>, vector<12x64xbf16>
    %cst_8 = arith.constant dense<0.000000e+00> : vector<32x64xf32>
    %25 = tpu.matmul %23, %24, %cst_8 {dimension_numbers = #tpu.dot_dimension_numbers<[1], [0], [0], [1], [0, 0, 1, 1], [], []>} : vector<32x12xbf16>, vector<12x64xbf16>, vector<32x64xf32> -> vector<32x64xf32>
    %26 = arith.truncf %22 : vector<32x12xf32> to vector<32x12xbf16>
    %c16 = arith.constant 16 : index
    %c0_9 = arith.constant 0 : index
    %27 = vector.load %arg1[%c16, %c0_9] : memref<1552x256xbf16, #tpu.memory_space<vmem>>, vector<12x64xbf16>
    %cst_10 = arith.constant dense<0.000000e+00> : vector<32x64xf32>
    %28 = tpu.matmul %26, %27, %cst_10 {dimension_numbers = #tpu.dot_dimension_numbers<[1], [0], [0], [1], [0, 0, 1, 1], [], []>} : vector<32x12xbf16>, vector<12x64xbf16>, vector<32x64xf32> -> vector<32x64xf32>
    %29 = arith.addf %25, %28 : vector<32x64xf32>
    %c0_11 = arith.constant 0 : index
    %c0_12 = arith.constant 0 : index
    %30 = vector.load %arg2[%c0_11, %c0_12] : memref<160x256xf32, #tpu.memory_space<vmem>>, vector<1x64xf32>
    %31 = vector.broadcast %30 : vector<1x64xf32> to vector<32x64xf32>
    %32 = arith.addf %29, %31 : vector<32x64xf32>
    %cst_13 = arith.constant 0.000000e+00 : f32
    %33 = vector.broadcast %cst_13 : f32 to vector<32x64xf32>
    %34 = arith.maximumf %32, %33 : vector<32x64xf32>
    %35 = arith.truncf %0 : vector<32x12xf32> to vector<32x12xbf16>
    %c160 = arith.constant 160 : index
    %c0_14 = arith.constant 0 : index
    %36 = vector.load %arg1[%c160, %c0_14] : memref<1552x256xbf16, #tpu.memory_space<vmem>>, vector<12x64xbf16>
    %cst_15 = arith.constant dense<0.000000e+00> : vector<32x64xf32>
    %37 = tpu.matmul %35, %36, %cst_15 {dimension_numbers = #tpu.dot_dimension_numbers<[1], [0], [0], [1], [0, 0, 1, 1], [], []>} : vector<32x12xbf16>, vector<12x64xbf16>, vector<32x64xf32> -> vector<32x64xf32>
    %c16_16 = arith.constant 16 : index
    %c0_17 = arith.constant 0 : index
    %38 = vector.load %arg2[%c16_16, %c0_17] : memref<160x256xf32, #tpu.memory_space<vmem>>, vector<1x64xf32>
    %39 = vector.broadcast %38 : vector<1x64xf32> to vector<32x64xf32>
    %40 = arith.addf %37, %39 : vector<32x64xf32>
    %c1_i32_18 = arith.constant 1 : i32
    %41 = tpu.dynamic_rotate %34 by %c1_i32_18 dim 0 : vector<32x64xf32>, i32 -> vector<32x64xf32>
    %42 = tpu.iota {dimensions = array<i32: 0>} : vector<32x64xi32>
    %c16_i32_19 = arith.constant 16 : i32
    %c0_i32_20 = arith.constant 0 : i32
    %43 = arith.cmpi eq, %c16_i32_19, %c0_i32_20 : i32
    %c1_i32_21 = arith.constant 1 : i32
    %44 = arith.select %43, %c1_i32_21, %c16_i32_19 : i32
    %45 = vector.broadcast %44 : i32 to vector<32x64xi32>
    %46 = arith.remsi %42, %45 : vector<32x64xi32>
    %c0_i32_22 = arith.constant 0 : i32
    %47 = vector.broadcast %c0_i32_22 : i32 to vector<32x64xi32>
    %48 = arith.cmpi ne, %46, %47 : vector<32x64xi32>
    %c0_i32_23 = arith.constant 0 : i32
    %49 = vector.broadcast %c0_i32_23 : i32 to vector<32x64xi32>
    %50 = arith.cmpi slt, %46, %49 : vector<32x64xi32>
    %c0_i32_24 = arith.constant 0 : i32
    %51 = arith.cmpi slt, %44, %c0_i32_24 : i32
    %52 = vector.broadcast %51 : i1 to vector<32x64xi1>
    %53 = vector.broadcast %52 : vector<32x64xi1> to vector<32x64xi1>
    %54 = arith.xori %50, %53 : vector<32x64xi1>
    %55 = arith.andi %54, %48 : vector<32x64xi1>
    %56 = vector.broadcast %44 : i32 to vector<32x64xi32>
    %57 = arith.addi %46, %56 : vector<32x64xi32>
    %58 = arith.select %55, %57, %46 : vector<32x64xi1>, vector<32x64xi32>
    %c1_i32_25 = arith.constant 1 : i32
    %59 = vector.broadcast %c1_i32_25 : i32 to vector<32x64xi32>
    %60 = arith.cmpi sge, %58, %59 : vector<32x64xi32>
    %cst_26 = arith.constant 0.000000e+00 : f32
    %61 = vector.broadcast %cst_26 : f32 to vector<32x64xf32>
    %62 = arith.select %60, %41, %61 : vector<32x64xi1>, vector<32x64xf32>
    %63 = tpu.concatenate %34, %62 in 1 : vector<32x64xf32>, vector<32x64xf32> -> vector<32x128xf32>
    %64 = arith.truncf %63 : vector<32x128xf32> to vector<32x128xbf16>
    %c32 = arith.constant 32 : index
    %c0_27 = arith.constant 0 : index
    %65 = vector.load %arg1[%c32, %c0_27] : memref<1552x256xbf16, #tpu.memory_space<vmem>>, vector<128x64xbf16>
    %cst_28 = arith.constant dense<0.000000e+00> : vector<32x64xf32>
    %66 = tpu.matmul %64, %65, %cst_28 {dimension_numbers = #tpu.dot_dimension_numbers<[1], [0], [0], [1], [0, 0, 1, 1], [], []>} : vector<32x128xbf16>, vector<128x64xbf16>, vector<32x64xf32> -> vector<32x64xf32>
    %c8 = arith.constant 8 : index
    %c0_29 = arith.constant 0 : index
    %67 = vector.load %arg2[%c8, %c0_29] : memref<160x256xf32, #tpu.memory_space<vmem>>, vector<1x64xf32>
    %68 = vector.broadcast %67 : vector<1x64xf32> to vector<32x64xf32>
    %69 = arith.addf %66, %68 : vector<32x64xf32>
    %cst_30 = arith.constant 0.000000e+00 : f32
    %70 = vector.broadcast %cst_30 : f32 to vector<32x64xf32>
    %71 = arith.maximumf %69, %70 : vector<32x64xf32>
    %72 = arith.addf %71, %40 : vector<32x64xf32>
    %cst_31 = arith.constant 0.000000e+00 : f32
    %73 = vector.broadcast %cst_31 : f32 to vector<32x64xf32>
    %74 = arith.maximumf %72, %73 : vector<32x64xf32>
    %c2_i32 = arith.constant 2 : i32
    %75 = tpu.dynamic_rotate %74 by %c2_i32 dim 0 : vector<32x64xf32>, i32 -> vector<32x64xf32>
    %76 = tpu.iota {dimensions = array<i32: 0>} : vector<32x64xi32>
    %c16_i32_32 = arith.constant 16 : i32
    %c0_i32_33 = arith.constant 0 : i32
    %77 = arith.cmpi eq, %c16_i32_32, %c0_i32_33 : i32
    %c1_i32_34 = arith.constant 1 : i32
    %78 = arith.select %77, %c1_i32_34, %c16_i32_32 : i32
    %79 = vector.broadcast %78 : i32 to vector<32x64xi32>
    %80 = arith.remsi %76, %79 : vector<32x64xi32>
    %c0_i32_35 = arith.constant 0 : i32
    %81 = vector.broadcast %c0_i32_35 : i32 to vector<32x64xi32>
    %82 = arith.cmpi ne, %80, %81 : vector<32x64xi32>
    %c0_i32_36 = arith.constant 0 : i32
    %83 = vector.broadcast %c0_i32_36 : i32 to vector<32x64xi32>
    %84 = arith.cmpi slt, %80, %83 : vector<32x64xi32>
    %c0_i32_37 = arith.constant 0 : i32
    %85 = arith.cmpi slt, %78, %c0_i32_37 : i32
    %86 = vector.broadcast %85 : i1 to vector<32x64xi1>
    %87 = vector.broadcast %86 : vector<32x64xi1> to vector<32x64xi1>
    %88 = arith.xori %84, %87 : vector<32x64xi1>
    %89 = arith.andi %88, %82 : vector<32x64xi1>
    %90 = vector.broadcast %78 : i32 to vector<32x64xi32>
    %91 = arith.addi %80, %90 : vector<32x64xi32>
    %92 = arith.select %89, %91, %80 : vector<32x64xi1>, vector<32x64xi32>
    %c2_i32_38 = arith.constant 2 : i32
    %93 = vector.broadcast %c2_i32_38 : i32 to vector<32x64xi32>
    %94 = arith.cmpi sge, %92, %93 : vector<32x64xi32>
    %cst_39 = arith.constant 0.000000e+00 : f32
    %95 = vector.broadcast %cst_39 : f32 to vector<32x64xf32>
    %96 = arith.select %94, %75, %95 : vector<32x64xi1>, vector<32x64xf32>
    %97 = tpu.concatenate %74, %96 in 1 : vector<32x64xf32>, vector<32x64xf32> -> vector<32x128xf32>
    %98 = arith.truncf %97 : vector<32x128xf32> to vector<32x128xbf16>
    %c176 = arith.constant 176 : index
    %c0_40 = arith.constant 0 : index
    %99 = vector.load %arg1[%c176, %c0_40] : memref<1552x256xbf16, #tpu.memory_space<vmem>>, vector<128x256xbf16>
    %cst_41 = arith.constant dense<0.000000e+00> : vector<32x256xf32>
    %100 = tpu.matmul %98, %99, %cst_41 {dimension_numbers = #tpu.dot_dimension_numbers<[1], [0], [0], [1], [0, 0, 1, 1], [], []>} : vector<32x128xbf16>, vector<128x256xbf16>, vector<32x256xf32> -> vector<32x256xf32>
    %c24 = arith.constant 24 : index
    %c0_42 = arith.constant 0 : index
    %101 = vector.load %arg2[%c24, %c0_42] : memref<160x256xf32, #tpu.memory_space<vmem>>, vector<1x256xf32>
    %102 = vector.broadcast %101 : vector<1x256xf32> to vector<32x256xf32>
    %103 = arith.addf %100, %102 : vector<32x256xf32>
    %104 = vector.extract_strided_slice %103 {offsets = [0, 0], sizes = [32, 128], strides = [1, 1]} : vector<32x256xf32> to vector<32x128xf32>
    %cst_43 = arith.constant 0.000000e+00 : f32
    %105 = vector.broadcast %cst_43 : f32 to vector<32x128xf32>
    %106 = arith.maximumf %104, %105 : vector<32x128xf32>
    %107 = vector.extract_strided_slice %103 {offsets = [0, 128], sizes = [32, 128], strides = [1, 1]} : vector<32x256xf32> to vector<32x128xf32>
    %c2_i32_44 = arith.constant 2 : i32
    %108 = tpu.dynamic_rotate %106 by %c2_i32_44 dim 0 : vector<32x128xf32>, i32 -> vector<32x128xf32>
    %109 = tpu.iota {dimensions = array<i32: 0>} : vector<32x128xi32>
    %c16_i32_45 = arith.constant 16 : i32
    %c0_i32_46 = arith.constant 0 : i32
    %110 = arith.cmpi eq, %c16_i32_45, %c0_i32_46 : i32
    %c1_i32_47 = arith.constant 1 : i32
    %111 = arith.select %110, %c1_i32_47, %c16_i32_45 : i32
    %112 = vector.broadcast %111 : i32 to vector<32x128xi32>
    %113 = arith.remsi %109, %112 : vector<32x128xi32>
    %c0_i32_48 = arith.constant 0 : i32
    %114 = vector.broadcast %c0_i32_48 : i32 to vector<32x128xi32>
    %115 = arith.cmpi ne, %113, %114 : vector<32x128xi32>
    %c0_i32_49 = arith.constant 0 : i32
    %116 = vector.broadcast %c0_i32_49 : i32 to vector<32x128xi32>
    %117 = arith.cmpi slt, %113, %116 : vector<32x128xi32>
    %c0_i32_50 = arith.constant 0 : i32
    %118 = arith.cmpi slt, %111, %c0_i32_50 : i32
    %119 = vector.broadcast %118 : i1 to vector<32x128xi1>
    %120 = vector.broadcast %119 : vector<32x128xi1> to vector<32x128xi1>
    %121 = arith.xori %117, %120 : vector<32x128xi1>
    %122 = arith.andi %121, %115 : vector<32x128xi1>
    %123 = vector.broadcast %111 : i32 to vector<32x128xi32>
    %124 = arith.addi %113, %123 : vector<32x128xi32>
    %125 = arith.select %122, %124, %113 : vector<32x128xi1>, vector<32x128xi32>
    %c2_i32_51 = arith.constant 2 : i32
    %126 = vector.broadcast %c2_i32_51 : i32 to vector<32x128xi32>
    %127 = arith.cmpi sge, %125, %126 : vector<32x128xi32>
    %cst_52 = arith.constant 0.000000e+00 : f32
    %128 = vector.broadcast %cst_52 : f32 to vector<32x128xf32>
    %129 = arith.select %127, %108, %128 : vector<32x128xi1>, vector<32x128xf32>
    %130 = tpu.concatenate %106, %129 in 1 : vector<32x128xf32>, vector<32x128xf32> -> vector<32x256xf32>
    %131 = arith.truncf %130 : vector<32x256xf32> to vector<32x256xbf16>
    %c304 = arith.constant 304 : index
    %c0_53 = arith.constant 0 : index
    %132 = vector.load %arg1[%c304, %c0_53] : memref<1552x256xbf16, #tpu.memory_space<vmem>>, vector<256x128xbf16>
    %cst_54 = arith.constant dense<0.000000e+00> : vector<32x128xf32>
    %133 = tpu.matmul %131, %132, %cst_54 {dimension_numbers = #tpu.dot_dimension_numbers<[1], [0], [0], [1], [0, 0, 1, 1], [], []>} : vector<32x256xbf16>, vector<256x128xbf16>, vector<32x128xf32> -> vector<32x128xf32>
    %c32_55 = arith.constant 32 : index
    %c0_56 = arith.constant 0 : index
    %134 = vector.load %arg2[%c32_55, %c0_56] : memref<160x256xf32, #tpu.memory_space<vmem>>, vector<1x128xf32>
    %135 = vector.broadcast %134 : vector<1x128xf32> to vector<32x128xf32>
    %136 = arith.addf %133, %135 : vector<32x128xf32>
    %cst_57 = arith.constant 0.000000e+00 : f32
    %137 = vector.broadcast %cst_57 : f32 to vector<32x128xf32>
    %138 = arith.maximumf %136, %137 : vector<32x128xf32>
    %139 = arith.addf %138, %107 : vector<32x128xf32>
    %cst_58 = arith.constant 0.000000e+00 : f32
    %140 = vector.broadcast %cst_58 : f32 to vector<32x128xf32>
    %141 = arith.maximumf %139, %140 : vector<32x128xf32>
    %c4_i32 = arith.constant 4 : i32
    %142 = tpu.dynamic_rotate %141 by %c4_i32 dim 0 : vector<32x128xf32>, i32 -> vector<32x128xf32>
    %143 = tpu.iota {dimensions = array<i32: 0>} : vector<32x128xi32>
    %c16_i32_59 = arith.constant 16 : i32
    %c0_i32_60 = arith.constant 0 : i32
    %144 = arith.cmpi eq, %c16_i32_59, %c0_i32_60 : i32
    %c1_i32_61 = arith.constant 1 : i32
    %145 = arith.select %144, %c1_i32_61, %c16_i32_59 : i32
    %146 = vector.broadcast %145 : i32 to vector<32x128xi32>
    %147 = arith.remsi %143, %146 : vector<32x128xi32>
    %c0_i32_62 = arith.constant 0 : i32
    %148 = vector.broadcast %c0_i32_62 : i32 to vector<32x128xi32>
    %149 = arith.cmpi ne, %147, %148 : vector<32x128xi32>
    %c0_i32_63 = arith.constant 0 : i32
    %150 = vector.broadcast %c0_i32_63 : i32 to vector<32x128xi32>
    %151 = arith.cmpi slt, %147, %150 : vector<32x128xi32>
    %c0_i32_64 = arith.constant 0 : i32
    %152 = arith.cmpi slt, %145, %c0_i32_64 : i32
    %153 = vector.broadcast %152 : i1 to vector<32x128xi1>
    %154 = vector.broadcast %153 : vector<32x128xi1> to vector<32x128xi1>
    %155 = arith.xori %151, %154 : vector<32x128xi1>
    %156 = arith.andi %155, %149 : vector<32x128xi1>
    %157 = vector.broadcast %145 : i32 to vector<32x128xi32>
    %158 = arith.addi %147, %157 : vector<32x128xi32>
    %159 = arith.select %156, %158, %147 : vector<32x128xi1>, vector<32x128xi32>
    %c4_i32_65 = arith.constant 4 : i32
    %160 = vector.broadcast %c4_i32_65 : i32 to vector<32x128xi32>
    %161 = arith.cmpi sge, %159, %160 : vector<32x128xi32>
    %cst_66 = arith.constant 0.000000e+00 : f32
    %162 = vector.broadcast %cst_66 : f32 to vector<32x128xf32>
    %163 = arith.select %161, %142, %162 : vector<32x128xi1>, vector<32x128xf32>
    %164 = tpu.concatenate %141, %163 in 1 : vector<32x128xf32>, vector<32x128xf32> -> vector<32x256xf32>
    %165 = arith.truncf %164 : vector<32x256xf32> to vector<32x256xbf16>
    %c560 = arith.constant 560 : index
    %c0_67 = arith.constant 0 : index
    %166 = vector.load %arg1[%c560, %c0_67] : memref<1552x256xbf16, #tpu.memory_space<vmem>>, vector<256x128xbf16>
    %cst_68 = arith.constant dense<0.000000e+00> : vector<32x128xf32>
    %167 = tpu.matmul %165, %166, %cst_68 {dimension_numbers = #tpu.dot_dimension_numbers<[1], [0], [0], [1], [0, 0, 1, 1], [], []>} : vector<32x256xbf16>, vector<256x128xbf16>, vector<32x128xf32> -> vector<32x128xf32>
    %c40 = arith.constant 40 : index
    %c0_69 = arith.constant 0 : index
    %168 = vector.load %arg2[%c40, %c0_69] : memref<160x256xf32, #tpu.memory_space<vmem>>, vector<1x128xf32>
    %169 = vector.broadcast %168 : vector<1x128xf32> to vector<32x128xf32>
    %170 = arith.addf %167, %169 : vector<32x128xf32>
    %cst_70 = arith.constant 0.000000e+00 : f32
    %171 = vector.broadcast %cst_70 : f32 to vector<32x128xf32>
    %172 = arith.maximumf %170, %171 : vector<32x128xf32>
    %c4_i32_71 = arith.constant 4 : i32
    %173 = tpu.dynamic_rotate %172 by %c4_i32_71 dim 0 : vector<32x128xf32>, i32 -> vector<32x128xf32>
    %174 = tpu.iota {dimensions = array<i32: 0>} : vector<32x128xi32>
    %c16_i32_72 = arith.constant 16 : i32
    %c0_i32_73 = arith.constant 0 : i32
    %175 = arith.cmpi eq, %c16_i32_72, %c0_i32_73 : i32
    %c1_i32_74 = arith.constant 1 : i32
    %176 = arith.select %175, %c1_i32_74, %c16_i32_72 : i32
    %177 = vector.broadcast %176 : i32 to vector<32x128xi32>
    %178 = arith.remsi %174, %177 : vector<32x128xi32>
    %c0_i32_75 = arith.constant 0 : i32
    %179 = vector.broadcast %c0_i32_75 : i32 to vector<32x128xi32>
    %180 = arith.cmpi ne, %178, %179 : vector<32x128xi32>
    %c0_i32_76 = arith.constant 0 : i32
    %181 = vector.broadcast %c0_i32_76 : i32 to vector<32x128xi32>
    %182 = arith.cmpi slt, %178, %181 : vector<32x128xi32>
    %c0_i32_77 = arith.constant 0 : i32
    %183 = arith.cmpi slt, %176, %c0_i32_77 : i32
    %184 = vector.broadcast %183 : i1 to vector<32x128xi1>
    %185 = vector.broadcast %184 : vector<32x128xi1> to vector<32x128xi1>
    %186 = arith.xori %182, %185 : vector<32x128xi1>
    %187 = arith.andi %186, %180 : vector<32x128xi1>
    %188 = vector.broadcast %176 : i32 to vector<32x128xi32>
    %189 = arith.addi %178, %188 : vector<32x128xi32>
    %190 = arith.select %187, %189, %178 : vector<32x128xi1>, vector<32x128xi32>
    %c4_i32_78 = arith.constant 4 : i32
    %191 = vector.broadcast %c4_i32_78 : i32 to vector<32x128xi32>
    %192 = arith.cmpi sge, %190, %191 : vector<32x128xi32>
    %cst_79 = arith.constant 0.000000e+00 : f32
    %193 = vector.broadcast %cst_79 : f32 to vector<32x128xf32>
    %194 = arith.select %192, %173, %193 : vector<32x128xi1>, vector<32x128xf32>
    %195 = tpu.concatenate %172, %194 in 1 : vector<32x128xf32>, vector<32x128xf32> -> vector<32x256xf32>
    %196 = arith.truncf %195 : vector<32x256xf32> to vector<32x256xbf16>
    %c816 = arith.constant 816 : index
    %c0_80 = arith.constant 0 : index
    %197 = vector.load %arg1[%c816, %c0_80] : memref<1552x256xbf16, #tpu.memory_space<vmem>>, vector<256x128xbf16>
    %cst_81 = arith.constant dense<0.000000e+00> : vector<32x128xf32>
    %198 = tpu.matmul %196, %197, %cst_81 {dimension_numbers = #tpu.dot_dimension_numbers<[1], [0], [0], [1], [0, 0, 1, 1], [], []>} : vector<32x256xbf16>, vector<256x128xbf16>, vector<32x128xf32> -> vector<32x128xf32>
    %c48 = arith.constant 48 : index
    %c0_82 = arith.constant 0 : index
    %199 = vector.load %arg2[%c48, %c0_82] : memref<160x256xf32, #tpu.memory_space<vmem>>, vector<1x128xf32>
    %200 = vector.broadcast %199 : vector<1x128xf32> to vector<32x128xf32>
    %201 = arith.addf %198, %200 : vector<32x128xf32>
    %cst_83 = arith.constant 0.000000e+00 : f32
    %202 = vector.broadcast %cst_83 : f32 to vector<32x128xf32>
    %203 = arith.maximumf %201, %202 : vector<32x128xf32>
    %204 = arith.addf %203, %141 : vector<32x128xf32>
    %cst_84 = arith.constant 0.000000e+00 : f32
    %205 = vector.broadcast %cst_84 : f32 to vector<32x128xf32>
    %206 = arith.maximumf %204, %205 : vector<32x128xf32>
    %c8_i32 = arith.constant 8 : i32
    %207 = tpu.dynamic_rotate %206 by %c8_i32 dim 0 : vector<32x128xf32>, i32 -> vector<32x128xf32>
    %208 = tpu.iota {dimensions = array<i32: 0>} : vector<32x128xi32>
    %c16_i32_85 = arith.constant 16 : i32
    %c0_i32_86 = arith.constant 0 : i32
    %209 = arith.cmpi eq, %c16_i32_85, %c0_i32_86 : i32
    %c1_i32_87 = arith.constant 1 : i32
    %210 = arith.select %209, %c1_i32_87, %c16_i32_85 : i32
    %211 = vector.broadcast %210 : i32 to vector<32x128xi32>
    %212 = arith.remsi %208, %211 : vector<32x128xi32>
    %c0_i32_88 = arith.constant 0 : i32
    %213 = vector.broadcast %c0_i32_88 : i32 to vector<32x128xi32>
    %214 = arith.cmpi ne, %212, %213 : vector<32x128xi32>
    %c0_i32_89 = arith.constant 0 : i32
    %215 = vector.broadcast %c0_i32_89 : i32 to vector<32x128xi32>
    %216 = arith.cmpi slt, %212, %215 : vector<32x128xi32>
    %c0_i32_90 = arith.constant 0 : i32
    %217 = arith.cmpi slt, %210, %c0_i32_90 : i32
    %218 = vector.broadcast %217 : i1 to vector<32x128xi1>
    %219 = vector.broadcast %218 : vector<32x128xi1> to vector<32x128xi1>
    %220 = arith.xori %216, %219 : vector<32x128xi1>
    %221 = arith.andi %220, %214 : vector<32x128xi1>
    %222 = vector.broadcast %210 : i32 to vector<32x128xi32>
    %223 = arith.addi %212, %222 : vector<32x128xi32>
    %224 = arith.select %221, %223, %212 : vector<32x128xi1>, vector<32x128xi32>
    %c8_i32_91 = arith.constant 8 : i32
    %225 = vector.broadcast %c8_i32_91 : i32 to vector<32x128xi32>
    %226 = arith.cmpi sge, %224, %225 : vector<32x128xi32>
    %cst_92 = arith.constant 0.000000e+00 : f32
    %227 = vector.broadcast %cst_92 : f32 to vector<32x128xf32>
    %228 = arith.select %226, %207, %227 : vector<32x128xi1>, vector<32x128xf32>
    %229 = tpu.concatenate %206, %228 in 1 : vector<32x128xf32>, vector<32x128xf32> -> vector<32x256xf32>
    %230 = arith.truncf %229 : vector<32x256xf32> to vector<32x256xbf16>
    %c1072 = arith.constant 1072 : index
    %c0_93 = arith.constant 0 : index
    %231 = vector.load %arg1[%c1072, %c0_93] : memref<1552x256xbf16, #tpu.memory_space<vmem>>, vector<256x12xbf16>
    %cst_94 = arith.constant dense<0.000000e+00> : vector<32x12xf32>
    %232 = tpu.matmul %230, %231, %cst_94 {dimension_numbers = #tpu.dot_dimension_numbers<[1], [0], [0], [1], [0, 0, 1, 1], [], []>} : vector<32x256xbf16>, vector<256x12xbf16>, vector<32x12xf32> -> vector<32x12xf32>
    %c56 = arith.constant 56 : index
    %c0_95 = arith.constant 0 : index
    %233 = vector.load %arg2[%c56, %c0_95] : memref<160x256xf32, #tpu.memory_space<vmem>>, vector<1x12xf32>
    %234 = vector.broadcast %233 : vector<1x12xf32> to vector<32x12xf32>
    %235 = arith.addf %232, %234 : vector<32x12xf32>
    %cst_96 = arith.constant 0.000000e+00 : f32
    %236 = vector.broadcast %cst_96 : f32 to vector<32x12xf32>
    %237 = arith.maximumf %235, %236 : vector<32x12xf32>
    %238 = arith.truncf %206 : vector<32x128xf32> to vector<32x128xbf16>
    %c1360 = arith.constant 1360 : index
    %c0_97 = arith.constant 0 : index
    %239 = vector.load %arg1[%c1360, %c0_97] : memref<1552x256xbf16, #tpu.memory_space<vmem>>, vector<128x12xbf16>
    %cst_98 = arith.constant dense<0.000000e+00> : vector<32x12xf32>
    %240 = tpu.matmul %238, %239, %cst_98 {dimension_numbers = #tpu.dot_dimension_numbers<[1], [0], [0], [1], [0, 0, 1, 1], [], []>} : vector<32x128xbf16>, vector<128x12xbf16>, vector<32x12xf32> -> vector<32x12xf32>
    %c72 = arith.constant 72 : index
    %c0_99 = arith.constant 0 : index
    %241 = vector.load %arg2[%c72, %c0_99] : memref<160x256xf32, #tpu.memory_space<vmem>>, vector<1x12xf32>
    %242 = vector.broadcast %241 : vector<1x12xf32> to vector<32x12xf32>
    %243 = arith.addf %240, %242 : vector<32x12xf32>
    %c8_i32_100 = arith.constant 8 : i32
    %244 = tpu.dynamic_rotate %237 by %c8_i32_100 dim 0 : vector<32x12xf32>, i32 -> vector<32x12xf32>
    %245 = tpu.iota {dimensions = array<i32: 0>} : vector<32x12xi32>
    %c16_i32_101 = arith.constant 16 : i32
    %c0_i32_102 = arith.constant 0 : i32
    %246 = arith.cmpi eq, %c16_i32_101, %c0_i32_102 : i32
    %c1_i32_103 = arith.constant 1 : i32
    %247 = arith.select %246, %c1_i32_103, %c16_i32_101 : i32
    %248 = vector.broadcast %247 : i32 to vector<32x12xi32>
    %249 = arith.remsi %245, %248 : vector<32x12xi32>
    %c0_i32_104 = arith.constant 0 : i32
    %250 = vector.broadcast %c0_i32_104 : i32 to vector<32x12xi32>
    %251 = arith.cmpi ne, %249, %250 : vector<32x12xi32>
    %c0_i32_105 = arith.constant 0 : i32
    %252 = vector.broadcast %c0_i32_105 : i32 to vector<32x12xi32>
    %253 = arith.cmpi slt, %249, %252 : vector<32x12xi32>
    %c0_i32_106 = arith.constant 0 : i32
    %254 = arith.cmpi slt, %247, %c0_i32_106 : i32
    %255 = vector.broadcast %254 : i1 to vector<32x12xi1>
    %256 = vector.broadcast %255 : vector<32x12xi1> to vector<32x12xi1>
    %257 = arith.xori %253, %256 : vector<32x12xi1>
    %258 = arith.andi %257, %251 : vector<32x12xi1>
    %259 = vector.broadcast %247 : i32 to vector<32x12xi32>
    %260 = arith.addi %249, %259 : vector<32x12xi32>
    %261 = arith.select %258, %260, %249 : vector<32x12xi1>, vector<32x12xi32>
    %c8_i32_107 = arith.constant 8 : i32
    %262 = vector.broadcast %c8_i32_107 : i32 to vector<32x12xi32>
    %263 = arith.cmpi sge, %261, %262 : vector<32x12xi32>
    %cst_108 = arith.constant 0.000000e+00 : f32
    %264 = vector.broadcast %cst_108 : f32 to vector<32x12xf32>
    %265 = arith.select %263, %244, %264 : vector<32x12xi1>, vector<32x12xf32>
    %266 = arith.truncf %237 : vector<32x12xf32> to vector<32x12xbf16>
    %c1328 = arith.constant 1328 : index
    %c0_109 = arith.constant 0 : index
    %267 = vector.load %arg1[%c1328, %c0_109] : memref<1552x256xbf16, #tpu.memory_space<vmem>>, vector<12x12xbf16>
    %cst_110 = arith.constant dense<0.000000e+00> : vector<32x12xf32>
    %268 = tpu.matmul %266, %267, %cst_110 {dimension_numbers = #tpu.dot_dimension_numbers<[1], [0], [0], [1], [0, 0, 1, 1], [], []>} : vector<32x12xbf16>, vector<12x12xbf16>, vector<32x12xf32> -> vector<32x12xf32>
    %269 = arith.truncf %265 : vector<32x12xf32> to vector<32x12xbf16>
    %c1344 = arith.constant 1344 : index
    %c0_111 = arith.constant 0 : index
    %270 = vector.load %arg1[%c1344, %c0_111] : memref<1552x256xbf16, #tpu.memory_space<vmem>>, vector<12x12xbf16>
    %cst_112 = arith.constant dense<0.000000e+00> : vector<32x12xf32>
    %271 = tpu.matmul %269, %270, %cst_112 {dimension_numbers = #tpu.dot_dimension_numbers<[1], [0], [0], [1], [0, 0, 1, 1], [], []>} : vector<32x12xbf16>, vector<12x12xbf16>, vector<32x12xf32> -> vector<32x12xf32>
    %272 = arith.addf %268, %271 : vector<32x12xf32>
    %c64 = arith.constant 64 : index
    %c0_113 = arith.constant 0 : index
    %273 = vector.load %arg2[%c64, %c0_113] : memref<160x256xf32, #tpu.memory_space<vmem>>, vector<1x12xf32>
    %274 = vector.broadcast %273 : vector<1x12xf32> to vector<32x12xf32>
    %275 = arith.addf %272, %274 : vector<32x12xf32>
    %cst_114 = arith.constant 0.000000e+00 : f32
    %276 = vector.broadcast %cst_114 : f32 to vector<32x12xf32>
    %277 = arith.maximumf %275, %276 : vector<32x12xf32>
    %278 = arith.addf %277, %243 : vector<32x12xf32>
    %cst_115 = arith.constant 0.000000e+00 : f32
    %279 = vector.broadcast %cst_115 : f32 to vector<32x12xf32>
    %280 = arith.maximumf %278, %279 : vector<32x12xf32>
    %c1488 = arith.constant 1488 : index
    %c0_116 = arith.constant 0 : index
    %281 = vector.load %arg1[%c1488, %c0_116] : memref<1552x256xbf16, #tpu.memory_space<vmem>>, vector<32x32xbf16>
    %282 = arith.truncf %280 : vector<32x12xf32> to vector<32x12xbf16>
    %cst_117 = arith.constant dense<0.000000e+00> : vector<32x12xf32>
    %283 = tpu.matmul %281, %282, %cst_117 {dimension_numbers = #tpu.dot_dimension_numbers<[1], [0], [0], [1], [0, 0, 1, 1], [], []>} : vector<32x32xbf16>, vector<32x12xbf16>, vector<32x12xf32> -> vector<32x12xf32>
    %c80 = arith.constant 80 : index
    %c0_118 = arith.constant 0 : index
    %284 = vector.load %arg2[%c80, %c0_118] : memref<160x256xf32, #tpu.memory_space<vmem>>, vector<32x1xf32>
    %285 = vector.broadcast %284 : vector<32x1xf32> to vector<32x12xf32>
    %286 = arith.addf %283, %285 : vector<32x12xf32>
    %cst_119 = arith.constant 0.000000e+00 : f32
    %287 = vector.broadcast %cst_119 : f32 to vector<32x12xf32>
    %288 = arith.cmpf ogt, %286, %287 : vector<32x12xf32>
    %cst_120 = arith.constant 0.00999999977 : f32
    %289 = vector.broadcast %cst_120 : f32 to vector<32x12xf32>
    %290 = arith.mulf %289, %286 : vector<32x12xf32>
    %291 = arith.select %288, %286, %290 : vector<32x12xi1>, vector<32x12xf32>
    %c112 = arith.constant 112 : index
    %c0_121 = arith.constant 0 : index
    %292 = vector.load %arg2[%c112, %c0_121] : memref<160x256xf32, #tpu.memory_space<vmem>>, vector<1x12xf32>
    %293 = vector.broadcast %292 : vector<1x12xf32> to vector<32x12xf32>
    %294 = arith.mulf %291, %293 : vector<32x12xf32>
    %c120 = arith.constant 120 : index
    %c0_122 = arith.constant 0 : index
    %295 = vector.load %arg2[%c120, %c0_122] : memref<160x256xf32, #tpu.memory_space<vmem>>, vector<1x12xf32>
    %296 = vector.broadcast %295 : vector<1x12xf32> to vector<32x12xf32>
    %297 = arith.addf %294, %296 : vector<32x12xf32>
    %c1520 = arith.constant 1520 : index
    %c0_123 = arith.constant 0 : index
    %298 = vector.load %arg1[%c1520, %c0_123] : memref<1552x256xbf16, #tpu.memory_space<vmem>>, vector<32x32xbf16>
    %299 = arith.truncf %297 : vector<32x12xf32> to vector<32x12xbf16>
    %cst_124 = arith.constant dense<0.000000e+00> : vector<32x12xf32>
    %300 = tpu.matmul %298, %299, %cst_124 {dimension_numbers = #tpu.dot_dimension_numbers<[1], [0], [0], [1], [0, 0, 1, 1], [], []>} : vector<32x32xbf16>, vector<32x12xbf16>, vector<32x12xf32> -> vector<32x12xf32>
    %c128 = arith.constant 128 : index
    %c0_125 = arith.constant 0 : index
    %301 = vector.load %arg2[%c128, %c0_125] : memref<160x256xf32, #tpu.memory_space<vmem>>, vector<32x1xf32>
    %302 = vector.broadcast %301 : vector<32x1xf32> to vector<32x12xf32>
    %303 = arith.addf %300, %302 : vector<32x12xf32>
    %c0_126 = arith.constant 0 : index
    %c0_127 = arith.constant 0 : index
    %304 = vector.load %arg3[%c0_126, %c0_127] : memref<32x12xf32, #tpu.memory_space<vmem>>, vector<32x12xf32>
    tpu.vector_store %arg3[%c0_126, %c0_127], %303 {strides = array<i32>} : memref<32x12xf32, #tpu.memory_space<vmem>>, vector<32x12xf32>,
    return
  }
}

</mosaic_0001>

<bundles_post_ra>
// kernel: tile.13
= control target key start
LH: loop header
LB: loop body
LE: loop exit
PB: predicated region body
PF: predicated region fallthrough
CT: control target
= control target key end

     0   :  { %s22_s0 = inlined_call_operand.vmem [shape: f32[16], index: 0, kind: input, shape index: {}]   ;;  %s23_s1 = inlined_call_operand.vmem [shape: f32[2,16], index: 1, kind: output, shape index: {}]  }
   0x1   :  { %v4_v0 = vld [vmem:[%s22_s0] ss:$0 sm:$0xff] }
   0x2   :  { %5 = vst [vmem:[%s23_s1] sm:$0x3] %v4_v0 }

// kernel: tile.0
= control target key start
LH: loop header
LB: loop body
LE: loop exit
PB: predicated region body
PF: predicated region fallthrough
CT: control target
= control target key end

     0   :  { %s131_s8 = smov 125   ;;  %s132_s9 = smov 126   ;;  %vm8_vm0 = vcmask 7168   ;;  %s222_s0 = inlined_call_operand.vmem [shape: f32[2,16], index: 0, kind: input, shape index: {}]   ;;  %s223_s1 = inlined_call_operand.vmem [shape: f32[32,1], index: 1, kind: output, shape index: {}]  }
   0x1   :  { %v5_v0 = vld [vmem:[%s222_s0] sm:$0x3]  ;;  %s130_s0 = smov 127   ;;  %s133_s10 = smov 124  }
   0x2   :  { %6 = vst [vmem:[#allocation0] sm:$0x3] %v5_v0  ;;  %s134_s11 = smov 123   ;;  %s135_s12 = smov 122  }
   0x3   :  { %s136_s13 = smov 121   ;;  %s137_s14 = smov 120  }
   0x4   :  { %s138_s17 = smov 119   ;;  %s139_s18 = smov 118  }
   0x5   :  { %s140_s19 = smov 117   ;;  %s141_s20 = smov 116  }
   0x6   :  { %s142_s21 = smov 115   ;;  %s143_s22 = smov 114  }
   0x7   :  { %s144_s23 = smov 113  }
   0x9   :  { %v10_v1 = vld [vmem:[#allocation0] sm:$0x3]  }
   0xa   :  { %v22_v2 = vld [vmem:[#allocation0] sm:$0x3]   ;;  %11 = vrot.lane.b32.xlu0 %v10_v1, %s130_s0 }
   0xb   :  { %23 = vrot.lane.b32.xlu1 %v22_v2, %s131_s8  ;;  %v16_v3 = vld [vmem:[#allocation0] sm:$0x3]  }
   0xc   :  { %v28_v4 = vld [vmem:[#allocation0] sm:$0x3]  }
   0xd   :  { %v34_v5 = vld [vmem:[#allocation0] sm:$0x3]  }
   0xe   :  { %17 = vrot.lane.b32.xlu0 %v16_v3, %s132_s9  ;;  %v40_v6 = vld [vmem:[#allocation0] sm:$0x3]  }
   0xf   :  { %29 = vrot.lane.b32.xlu1 %v28_v4, %s133_s10  ;;  %v46_v7 = vld [vmem:[#allocation0] sm:$0x3]  }
  0x10   :  { %v52_v8 = vld [vmem:[#allocation0] sm:$0x3]  }
  0x11   :  { %v58_v9 = vld [vmem:[#allocation0] sm:$0x3]  }
  0x12   :  { %35 = vrot.lane.b32.xlu0 %v34_v5, %s134_s11  ;;  %v64_v10 = vld [vmem:[#allocation0] sm:$0x3]  }
  0x13   :  { %41 = vrot.lane.b32.xlu1 %v40_v6, %s135_s12  ;;  %v7_v11 = vld [vmem:[#allocation0] sm:$0x3]  }
  0x14   :  { %9 = vst.msk [vmem:[%s223_s1] ss:$16 sm:$0x3] %vm8_vm0, %v7_v11   ;;  %v70_v12 = vld [vmem:[#allocation0] sm:$0x3]  }
  0x15   :  { %v76_v13 = vld [vmem:[#allocation0] sm:$0x3]  }
  0x16   :  { %47 = vrot.lane.b32.xlu0 %v46_v7, %s136_s13  ;;  %v82_v14 = vld [vmem:[#allocation0] sm:$0x3]  }
  0x17   :  { %53 = vrot.lane.b32.xlu1 %v52_v8, %s137_s14  ;;  %v88_v15 = vld [vmem:[#allocation0] sm:$0x3]  }
  0x18   :  { %v94_v16 = vld [vmem:[#allocation0] sm:$0x3]  }
  0x1a   :  { %59 = vrot.lane.b32.xlu0 %v58_v9, %s138_s17 }
  0x1b   :  { %65 = vrot.lane.b32.xlu1 %v64_v10, %s139_s18 }
  0x1e   :  { %71 = vrot.lane.b32.xlu0 %v70_v12, %s140_s19 }
  0x1f   :  { %77 = vrot.lane.b32.xlu1 %v76_v13, %s141_s20 }
  0x22   :  { %83 = vrot.lane.b32.xlu0 %v82_v14, %s142_s21 }
  0x23   :  { %89 = vrot.lane.b32.xlu1 %v88_v15, %s143_s22 }
  0x26   :  { %95 = vrot.lane.b32.xlu0 %v94_v16, %s144_s23 }
  0x7c   :  { %v12_v17 = vpop.permute.xlu0 %11  }
  0x7d   :  { %v24_v18 = vpop.permute.xlu1 %23   ;;  %100 = vst.msk [vmem:[%s223_s1 + $0x1] ss:$16 sm:$0x3] %vm8_vm0, %v12_v17  }
  0x7e   :  { %102 = vst.msk [vmem:[%s223_s1 + $0x3] ss:$16 sm:$0x3] %vm8_vm0, %v24_v18  }
  0x80   :  { %v18_v19 = vpop.permute.xlu0 %17  }
  0x81   :  { %v30_v20 = vpop.permute.xlu1 %29   ;;  %101 = vst.msk [vmem:[%s223_s1 + $0x2] ss:$16 sm:$0x3] %vm8_vm0, %v18_v19  }
  0x82   :  { %103 = vst.msk [vmem:[%s223_s1 + $0x4] ss:$16 sm:$0x3] %vm8_vm0, %v30_v20  }
  0x84   :  { %v36_v21 = vpop.permute.xlu0 %35  }
  0x85   :  { %v42_v22 = vpop.permute.xlu1 %41   ;;  %104 = vst.msk [vmem:[%s223_s1 + $0x5] ss:$16 sm:$0x3] %vm8_vm0, %v36_v21  }
  0x86   :  { %105 = vst.msk [vmem:[%s223_s1 + $0x6] ss:$16 sm:$0x3] %vm8_vm0, %v42_v22  }
  0x88   :  { %v48_v23 = vpop.permute.xlu0 %47  }
  0x89   :  { %v54_v24 = vpop.permute.xlu1 %53   ;;  %106 = vst.msk [vmem:[%s223_s1 + $0x7] ss:$16 sm:$0x3] %vm8_vm0, %v48_v23  }
  0x8a   :  { %107 = vst.msk [vmem:[%s223_s1 + $0x8] ss:$16 sm:$0x3] %vm8_vm0, %v54_v24  }
  0x8c   :  { %v60_v25 = vpop.permute.xlu0 %59  }
  0x8d   :  { %v66_v26 = vpop.permute.xlu1 %65   ;;  %108 = vst.msk [vmem:[%s223_s1 + $0x9] ss:$16 sm:$0x3] %vm8_vm0, %v60_v25  }
  0x8e   :  { %109 = vst.msk [vmem:[%s223_s1 + $0xa] ss:$16 sm:$0x3] %vm8_vm0, %v66_v26  }
  0x90   :  { %v72_v27 = vpop.permute.xlu0 %71  }
  0x91   :  { %v78_v28 = vpop.permute.xlu1 %77   ;;  %110 = vst.msk [vmem:[%s223_s1 + $0xb] ss:$16 sm:$0x3] %vm8_vm0, %v72_v27  }
  0x92   :  { %111 = vst.msk [vmem:[%s223_s1 + $0xc] ss:$16 sm:$0x3] %vm8_vm0, %v78_v28  }
  0x94   :  { %v84_v29 = vpop.permute.xlu0 %83  }
  0x95   :  { %v90_v30 = vpop.permute.xlu1 %89   ;;  %112 = vst.msk [vmem:[%s223_s1 + $0xd] ss:$16 sm:$0x3] %vm8_vm0, %v84_v29  }
  0x96   :  { %113 = vst.msk [vmem:[%s223_s1 + $0xe] ss:$16 sm:$0x3] %vm8_vm0, %v90_v30  }
  0x98   :  { %v96_v31 = vpop.permute.xlu0 %95  }
  0x99   :  { %114 = vst.msk [vmem:[%s223_s1 + $0xf] ss:$16 sm:$0x3] %vm8_vm0, %v96_v31  }

// kernel: stock_block_layer.1
= control target key start
LH: loop header
LB: loop body
LE: loop exit
PB: predicated region body
PF: predicated region fallthrough
CT: control target
= control target key end

     0   :  { %vm109_vm0 = vcmask 1045504   ;;  %v23_v0 = vlaneseq  ;;  %vm102_vm1 = vcmask 97280   ;;  %s2482_s16 = smov 64   ;;  %vm322_vm5 = vcmask 523264   ;;  %s3085_s1 = inlined_call_operand.vmem [shape: bf16[1552,256], index: 1, kind: input, shape index: {}]   ;;  %s3086_s0 = inlined_call_operand.vmem [shape: f32[32,12], index: 0, kind: input, shape index: {}]   ;;  %s3087_s2 = inlined_call_operand.vmem [shape: f32[160,256], index: 2, kind: input, shape index: {}]   ;;  %s3088_s3 = inlined_call_operand.vmem [shape: f32[32,12], index: 3, kind: output, shape index: {}]  }
   0x1   :  { %v15_v1 = vld [vmem:[%s3086_s0] sm:$0xff]  ;;  %v16_v3 = vld [vmem:[%s3086_s0 + $0x8] sm:$0xff]  ;;  %v17_v4 = vld [vmem:[%s3086_s0 + $0x10] sm:$0xff]  ;;  %vm2484_vm9 = vmmov 1  }
   0x2   :  { %v2369_v2 = vld [vmem:[%s3085_s1] ss:$8 sps:$4 sm:$0x3f]   ;;  %v19_v5 = vrot.slane %v15_v1, 7  ;;  %v20_v6 = vrot.slane %v16_v3, 7  ;;  %v21_v7 = vrot.slane %v17_v4, 7  ;;  %v89_v9 = vpack.c.bf16 %v16_v3, %v15_v1 }
   0x3   :  { %v2518_v8 = vshrl.u32 %v23_v0, 7  ;;  %v18_v10 = vld [vmem:[%s3086_s0 + $0x18] sm:$0xff]  ;;  %2339 = vmatprep.subr.msk.bf16.mxu1 %vm109_vm0, %v2369_v2  ;;  %v174_v11 = vsel %vm109_vm0, %v2369_v2, 0  ;;  %v2372_v28 = vld [vmem:[%s3085_s1 + $0x80] ss:$8 sps:$4 sm:$0xff]  }
   0x4   :  { %v2370_v12 = vld [vmem:[%s3085_s1 + $0x10] ss:$8 sps:$4 sm:$0x3f]   ;;  %v2528_v13 = vpack.c.bf16 %v18_v10, %v17_v4  ;;  %2259 = vmatpush3.bf16.msra.mxu1 %v174_v11  ;;  %2260 = vmatprep.mubr.msk.bf16.mxu1 %vm102_vm1, %v89_v9  ;;  %v22_v14 = vrot.slane %v18_v10, 7  ;;  %v2374_v30 = vld [vmem:[%s3085_s1 + $0x60] ss:$8 sps:$4 sm:$0xff]  }
   0x5   :  { %vm25_vm2 = vcmp.lt.s32.totalorder %v2518_v8, 1  ;;  %v2533_v15 = vand.u32 15, %v2518_v8  ;;  %v31_v16 = vadd.s32 16, %v2518_v8  ;;  %2338 = vmatprep.subr.msk.bf16.mxu0 %vm109_vm0, %v2370_v12  ;;  %v111_v17 = vsel %vm109_vm0, %v2370_v12, 0  ;;  %v2371_v27 = vld [vmem:[%s3085_s1 + $0x90] ss:$8 sps:$4 sm:$0xff]  }
   0x6   :  { %v28_v18 = vsel %vm25_vm2, %v19_v5, %v20_v6  ;;  %v27_v19 = vsel %vm25_vm2, %v20_v6, %v21_v7  ;;  %2253 = vmatpush3.bf16.msra.mxu0 %v111_v17  ;;  %v29_v20 = vsel %vm25_vm2, %v22_v14, %v19_v5  ;;  %v26_v23 = vsel %vm25_vm2, %v21_v7, %v22_v14  ;;  %v2373_v29 = vld [vmem:[%s3085_s1 + $0x70] ss:$8 sps:$4 sm:$0xff]   ;;  %v2376_v32 = vld [vmem:[%s3085_s1 + $0x40] ss:$8 sps:$4 sm:$0xff]  }
   0x7   :  { %vm81_vm3 = vcmp.ge.s32.totalorder %v2533_v15, 1  ;;  %v2545_v21 = vand.u32 15, %v31_v16  ;;  %2261 = vmatmul.mubr.msk.bf16.vlgmr.msra.gmra.mxu1 %vm102_vm1, %v2528_v13  ;;  %2270 = vmatprep.subr.bf16.mxu1 %v2371_v27  ;;  %v2375_v31 = vld [vmem:[%s3085_s1 + $0x50] ss:$8 sps:$4 sm:$0xff]   ;;  %v225_v37 = vld [vmem:[%s3087_s2] ss:$0 sm:$0xff] }
   0x8   :  { %v85_v22 = vsel %vm81_vm3, %v29_v20, 0.0  ;;  %2271 = vmatpush3.bf16.msra.mxu1 %v2371_v27  ;;  %v2377_v42 = vld [vmem:[%s3085_s1 + $0xa0] ss:$8 sps:$4 sm:$0x3f]   ;;  %v2378_v43 = vld [vmem:[%s3085_s1 + $0x30] ss:$8 sps:$4 sm:$0xff]  }
   0x9   :  { %v93_v24 = vpack.c.bf16 %v28_v18, %v85_v22  ;;  %vm83_vm4 = vcmp.ge.s32.totalorder %v2545_v21, 1  ;;  %2272 = vmatprep.subr.bf16.mxu1 %v2372_v28  ;;  %2340 = vmatprep.subr.msk.bf16.mxu0 %vm109_vm0, %v2377_v42  ;;  %v243_v49 = vsel %vm109_vm0, %v2377_v42, 0  ;;  %v2379_v53 = vld [vmem:[%s3085_s1 + $0x20] ss:$8 sps:$4 sm:$0xff]   ;;  %v2382_v22 = vld [vmem:[%s3085_s1 + $0x124] ss:$8 sps:$4 sm:$0xff]  }
   0xa   :  { %v87_v25 = vsel %vm83_vm4, %v27_v19, 0.0  ;;  %v2380_v20 = vld [vmem:[%s3085_s1 + $0x120] ss:$8 sps:$4 sm:$0xff]   ;;  %v2391_v27 = vld [vmem:[%s3085_s1 + $0xf4] ss:$8 sps:$4 sm:$0xff]   ;;  %vm459_vm6 = vcmp.lt.s32.totalorder %v2518_v8, 2 }
   0xb   :  { %2254 = vmatprep.mubr.msk.bf16.mxu0 %vm102_vm1, %v93_v24  ;;  %v94_v26 = vpack.c.bf16 %v26_v23, %v87_v25  ;;  %v2385_v23 = vld [vmem:[%s3085_s1 + $0x114] ss:$8 sps:$4 sm:$0xff]   ;;  %v2383_v24 = vld [vmem:[%s3085_s1 + $0x110] ss:$8 sps:$4 sm:$0xff]   ;;  %v2388_v25 = vld [vmem:[%s3085_s1 + $0x104] ss:$8 sps:$4 sm:$0xff]  }
   0xc   :  { %2273 = vmatpush3.bf16.msra.mxu1 %v2372_v28  ;;  %v2389_v28 = vld [vmem:[%s3085_s1 + $0xf0] ss:$8 sps:$4 sm:$0xff]   ;;  %vm464_vm7 = vcmp.ge.s32.totalorder %v2533_v15, 2  ;;  %vm466_vm8 = vcmp.ge.s32.totalorder %v2545_v21, 2  ;;  %vm870_vm12 = vcmp.lt.s32.totalorder %v2518_v8, 4  ;;  %vm875_vm13 = vcmp.ge.s32.totalorder %v2533_v15, 4 }
   0xd   :  { %2255 = vmatmul.mubr.msk.bf16.vlgmr.msra.gmra.mxu0 %vm102_vm1, %v94_v26  ;;  %2274 = vmatprep.subr.bf16.mxu1 %v2373_v29  ;;  %v2386_v26 = vld [vmem:[%s3085_s1 + $0x100] ss:$8 sps:$4 sm:$0xff]   ;;  %vm2009_vm10 = vmpackc.low %vm2484_vm9, %vm464_vm7  ;;  %vm877_vm14 = vcmp.ge.s32.totalorder %v2545_v21, 4 }
   0xe   :  { %2266 = vmatprep.mubr.msk.bf16.mxu0 %vm102_vm1, %v89_v9  ;;  %2265 = vmatpush3.bf16.msra.mxu0 %v243_v49  ;;  %vm2012_vm11 = vmpackc.low %vm2484_vm9, %vm466_vm8 }
   0xf   :  { %603 = vmatprep.subr.bf16.mxu0 %v2382_v22  ;;  %v2407_v22 = vld [vmem:[%s3085_s1 + $0x190] ss:$8 sps:$4 sm:$0xff]   ;;  %vm2846_vm15 = vmpackc.low %vm2484_vm9, %vm875_vm13 }
  0x10   :  { %2275 = vmatpush3.bf16.msra.mxu1 %v2373_v29  ;;  %v2394_v29 = vld [vmem:[%s3085_s1 + $0xe4] ss:$8 sps:$4 sm:$0xff]  }
  0x11   :  { %2276 = vmatprep.subr.bf16.mxu1 %v2374_v30 }
  0x14   :  { %2277 = vmatpush3.bf16.msra.mxu1 %v2374_v30  ;;  %v2392_v30 = vld [vmem:[%s3085_s1 + $0xe0] ss:$8 sps:$4 sm:$0xff]  }
  0x15   :  { %2278 = vmatprep.subr.bf16.mxu1 %v2375_v31  ;;  %2267 = vmatmul.mubr.msk.bf16.vlgmr.msra.gmra.mxu0 %vm102_vm1, %v2528_v13 }
  0x16   :  { %604 = vmatpush1.bf16.msra.mxu0 %v2380_v20 }
  0x17   :  { %605 = vmatprep.subr.bf16.mxu0 %v2385_v23  ;;  %v2408_v23 = vld [vmem:[%s3085_s1 + $0x200] ss:$8 sps:$4 sm:$0xff]  }
  0x18   :  { %2279 = vmatpush3.bf16.msra.mxu1 %v2375_v31  ;;  %v2397_v31 = vld [vmem:[%s3085_s1 + $0xd4] ss:$8 sps:$4 sm:$0xff]  }
  0x19   :  { %2280 = vmatprep.subr.bf16.mxu1 %v2376_v32 }
  0x1a   :  { %606 = vmatpush1.bf16.msra.mxu0 %v2383_v24 }
  0x1b   :  { %607 = vmatprep.subr.bf16.mxu0 %v2388_v25 }
  0x1c   :  { %2281 = vmatpush3.bf16.msra.mxu1 %v2376_v32  ;;  %v2395_v32 = vld [vmem:[%s3085_s1 + $0xd0] ss:$8 sps:$4 sm:$0xff]  }
  0x1d   :  { %2282 = vmatprep.subr.bf16.mxu1 %v2378_v43 }
  0x1e   :  { %608 = vmatpush1.bf16.msra.mxu0 %v2386_v26 }
  0x1f   :  { %609 = vmatprep.subr.bf16.mxu0 %v2391_v27 }
  0x20   :  { %2283 = vmatpush3.bf16.msra.mxu1 %v2378_v43 }
  0x21   :  { %2284 = vmatprep.subr.bf16.mxu1 %v2379_v53 }
  0x22   :  { %610 = vmatpush1.bf16.msra.mxu0 %v2389_v28 }
  0x23   :  { %611 = vmatprep.subr.bf16.mxu0 %v2394_v29 }
  0x24   :  { %2285 = vmatpush3.bf16.msra.mxu1 %v2379_v53  ;;  %v2403_v53 = vld [vmem:[%s3085_s1 + $0xb4] ss:$8 sps:$4 sm:$0xff]  }
  0x26   :  { %612 = vmatpush1.bf16.msra.mxu0 %v2392_v30 }
  0x27   :  { %613 = vmatprep.subr.bf16.mxu0 %v2397_v31 }
  0x2a   :  { %614 = vmatpush1.bf16.msra.mxu0 %v2395_v32 }
  0xc7   :  { %v2262_v33 = vpop.f32.mrf.mxu1 }
  0xc9   :  { %v210_v34 = vpop.f32.mrf.mxu1 }
  0xcb   :  { %v2263_v38 = vpop.f32.mrf.mxu1 }
  0xcd   :  { %v2256_v35 = vpop.f32.mrf.mxu0  ;;  %v213_v47 = vpop.f32.mrf.mxu1 }
  0xce   :  { %v219_v36 = vadd.f32 %v2262_v33, %v2256_v35  ;;  %v2400_v33 = vld [vmem:[%s3085_s1 + $0xc4] ss:$8 sps:$4 sm:$0xff]  }
  0xcf   :  { %v147_v39 = vpop.f32.mrf.mxu0  ;;  %615 = vmatprep.subr.bf16.mxu0 %v2400_v33 }
  0xd0   :  { %v211_v40 = vadd.f32 %v210_v34, %v147_v39  ;;  %v228_v44 = vadd.f32 %v225_v37, %v219_v36  ;;  %v2398_v34 = vld [vmem:[%s3085_s1 + $0xc0] ss:$8 sps:$4 sm:$0xff]  }
  0xd1   :  { %v2257_v41 = vpop.f32.mrf.mxu0  ;;  %616 = vmatpush1.bf16.msra.mxu0 %v2398_v34 }
  0xd2   :  { %v226_v45 = vadd.f32 %v225_v37, %v211_v40  ;;  %v222_v46 = vadd.f32 %v2263_v38, %v2257_v41  ;;  %v232_v54 = vmax.f32 %v228_v44, 0.0  ;;  %v236_v38 = vld [vmem:[%s3087_s2 + $0x20] ss:$0 sm:$0xff]  ;;  %617 = vmatprep.subr.bf16.mxu0 %v2403_v53 }
  0xd3   :  { %v150_v48 = vpop.f32.mrf.mxu0 }
  0xd4   :  { %v230_v50 = vmax.f32 %v226_v45, 0.0  ;;  %v229_v51 = vadd.f32 %v225_v37, %v222_v46  ;;  %v214_v52 = vadd.f32 %v213_v47, %v150_v48  ;;  %v296_v60 = vrot.slane %v232_v54, 7 }
  0xd5   :  { %v2268_v35 = vpop.f32.mrf.mxu0 }
  0xd6   :  { %v233_v55 = vmax.f32 %v229_v51, 0.0  ;;  %v227_v56 = vadd.f32 %v225_v37, %v214_v52  ;;  %v294_v57 = vrot.slane %v230_v50, 7  ;;  %v345_v37 = vld [vmem:[%s3087_s2 + $0x10] ss:$0 sm:$0xff]  ;;  %v288_v43 = vadd.f32 %v2268_v35, %v236_v38 }
  0xd7   :  { %v279_v36 = vpop.f32.mrf.mxu0 }
  0xd8   :  { %v297_v58 = vrot.slane %v233_v55, 7  ;;  %v231_v59 = vmax.f32 %v227_v56, 0.0  ;;  %v280_v47 = vadd.f32 %v279_v36, %v236_v38  ;;  %v2409_v36 = vld [vmem:[%s3085_s1 + $0x180] ss:$8 sps:$4 sm:$0xff]  }
  0xd9   :  { %v2269_v41 = vpop.f32.mrf.mxu0 }
  0xda   :  { %v295_v61 = vrot.slane %v231_v59, 7  ;;  %v301_v62 = vsel %vm25_vm2, %v297_v58, %v294_v57  ;;  %v298_v4 = vsel %vm25_vm2, %v296_v60, %v297_v58  ;;  %v2401_v58 = vld [vmem:[%s3085_s1 + $0xb0] ss:$8 sps:$4 sm:$0xff]  }
  0xdb   :  { %v302_v63 = vsel %vm81_vm3, %v301_v62, 0.0  ;;  %v282_v51 = vpop.f32.mrf.mxu0  ;;  %618 = vmatpush1.bf16.msra.mxu0 %v2401_v58  ;;  %vm1778_vm3 = vcmask 261120  }
  0xdc   :  { %v300_v0 = vsel %vm25_vm2, %v294_v57, %v295_v61  ;;  %v299_v1 = vsel %vm25_vm2, %v295_v61, %v296_v60  ;;  %vm2857_vm2 = vmpackc.low %vm2484_vm9, %vm877_vm14 }
  0xdd   :  { %v2347_v2 = vpack.i.bf16 %v300_v0, %v302_v63  ;;  %v304_v3 = vsel %vm83_vm4, %v299_v1, 0.0 }
  0xde   :  { %v2352_v5 = vpack.i.bf16 %v298_v4, %v304_v3 }
  0xdf   :  { %2348 = vrot.lane.b32.xlu0 %v2347_v2, %s2482_s16  ;;  %v2483_v2 = vmov 0  }
  0xe0   :  { %635 = vmatprep.mubr.bf16.mxu0 %v2483_v2  ;;  %2368 = vset.pattern.permute.xlu1 %v2483_v2 }
  0xe1   :  { %2367 = vset.pattern.permute.xlu0 %v2483_v2 }
  0xe3   :  { %2353 = vrot.lane.b32.xlu0 %v2352_v5, %s2482_s16 }
 0x151   :  { %v2349_v6 = vpop.permute.xlu0 %2348 }
 0x152   :  { %v2351_v7 = vunpack.i.h.bf16 %v2349_v6  ;;  %v2350_v9 = vunpack.i.l.bf16 %v2349_v6 }
 0x154   :  { %v323_v10 = vsel %vm322_vm5, %v230_v50, %v2350_v9  ;;  %v324_v11 = vsel %vm322_vm5, %v231_v59, %v2351_v7  ;;  %v291_v50 = vadd.f32 %v2269_v41, %v236_v38  ;;  %v283_v59 = vadd.f32 %v282_v51, %v236_v38  ;;  %v2411_v38 = vld [vmem:[%s3085_s1 + $0x170] ss:$8 sps:$4 sm:$0xff]  }
 0x155   :  { %v2354_v12 = vpop.permute.xlu0 %2353  ;;  %v327_v13 = vpack.c.bf16 %v324_v11, %v323_v10  ;;  %v2414_v41 = vld [vmem:[%s3085_s1 + $0x1d0] ss:$8 sps:$4 sm:$0xff]  }
 0x156   :  { %v2356_v14 = vunpack.i.h.bf16 %v2354_v12  ;;  %v2355_v16 = vunpack.i.l.bf16 %v2354_v12 }
 0x157   :  { %2286 = vmatprep.mubr.bf16.mxu1 %v327_v13 }
 0x158   :  { %v326_v17 = vsel %vm322_vm5, %v233_v55, %v2356_v14  ;;  %v325_v18 = vsel %vm322_vm5, %v232_v54, %v2355_v16  ;;  %v2404_v16 = vld [vmem:[%s3085_s1 + $0x220] ss:$8 sps:$4 sm:$0xff]  }
 0x159   :  { %v328_v19 = vpack.c.bf16 %v326_v17, %v325_v18  ;;  %v2405_v17 = vld [vmem:[%s3085_s1 + $0x1a0] ss:$8 sps:$4 sm:$0xff]   ;;  %v2406_v18 = vld [vmem:[%s3085_s1 + $0x210] ss:$8 sps:$4 sm:$0xff]   ;;  %2116 = vmatprep.subr.bf16.mxu1 %v2404_v16 }
 0x15a   :  { %v2421_v16 = vld [vmem:[%s3085_s1 + $0x2a0] ss:$8 sps:$4 sm:$0xff]  }
 0x15b   :  { %2287 = vmatmul.mubr.bf16.vlgmr.msra.gmra.mxu1 %v328_v19 }
 0x15c   :  { %2117 = vmatpush3.bf16.msra.mxu1 %v2405_v17  ;;  %v2422_v17 = vld [vmem:[%s3085_s1 + $0x310] ss:$8 sps:$4 sm:$0xff]  }
 0x15d   :  { %2118 = vmatprep.subr.bf16.mxu1 %v2406_v18  ;;  %v2423_v18 = vld [vmem:[%s3085_s1 + $0x290] ss:$8 sps:$4 sm:$0xff]  }
 0x160   :  { %2119 = vmatpush3.bf16.msra.mxu1 %v2407_v22  ;;  %v2426_v22 = vld [vmem:[%s3085_s1 + $0x2f0] ss:$8 sps:$4 sm:$0xff]  }
 0x161   :  { %2120 = vmatprep.subr.bf16.mxu1 %v2408_v23  ;;  %v2427_v23 = vld [vmem:[%s3085_s1 + $0x270] ss:$8 sps:$4 sm:$0xff]  }
 0x164   :  { %2121 = vmatpush3.bf16.msra.mxu1 %v2409_v36 }
 0x21b   :  { %v2288_v39 = vpop.f32.mrf.mxu1 }
 0x21c   :  { %v437_v40 = vadd.f32 %v2288_v39, %v345_v37  ;;  %v2412_v39 = vld [vmem:[%s3085_s1 + $0x1e0] ss:$8 sps:$4 sm:$0xff]  }
 0x21d   :  { %v428_v42 = vpop.f32.mrf.mxu1 }
 0x21e   :  { %v445_v44 = vmax.f32 %v437_v40, 0.0  ;;  %v429_v45 = vadd.f32 %v428_v42, %v345_v37  ;;  %v2413_v40 = vld [vmem:[%s3085_s1 + $0x160] ss:$8 sps:$4 sm:$0xff]   ;;  %v2415_v42 = vld [vmem:[%s3085_s1 + $0x150] ss:$8 sps:$4 sm:$0xff]  }
 0x21f   :  { %v2289_v46 = vpop.f32.mrf.mxu1 }
 0x220   :  { %v443_v48 = vmax.f32 %v429_v45, 0.0  ;;  %v440_v49 = vadd.f32 %v2289_v46, %v345_v37  ;;  %v449_v54 = vadd.f32 %v445_v44, %v288_v43  ;;  %v2416_v43 = vld [vmem:[%s3085_s1 + $0x1c0] ss:$8 sps:$4 sm:$0xff]   ;;  %v2418_v45 = vld [vmem:[%s3085_s1 + $0x1b0] ss:$8 sps:$4 sm:$0xff]  }
 0x221   :  { %v431_v52 = vpop.f32.mrf.mxu1  ;;  %v2417_v44 = vld [vmem:[%s3085_s1 + $0x140] ss:$8 sps:$4 sm:$0xff]   ;;  %v2419_v46 = vld [vmem:[%s3085_s1 + $0x130] ss:$8 sps:$4 sm:$0xff]  }
 0x222   :  { %v447_v55 = vadd.f32 %v443_v48, %v280_v47  ;;  %v446_v56 = vmax.f32 %v440_v49, 0.0  ;;  %v432_v57 = vadd.f32 %v431_v52, %v345_v37  ;;  %v453_v63 = vmax.f32 %v449_v54, 0.0  ;;  %v2410_v37 = vld [vmem:[%s3085_s1 + $0x1f0] ss:$8 sps:$4 sm:$0xff]   ;;  %v2420_v47 = vld [vmem:[%s3085_s1 + $0x320] ss:$8 sps:$4 sm:$0xff]  }
 0x223   :  { %2122 = vmatprep.subr.bf16.mxu1 %v2410_v37  ;;  %2144 = vmatprep.subr.bf16.mxu0 %v2420_v47  ;;  %v515_v49 = vsub.s32 0, %v2518_v8 }
 0x224   :  { %v451_v60 = vmax.f32 %v447_v55, 0.0  ;;  %v450_v61 = vadd.f32 %v446_v56, %v291_v50  ;;  %v444_v62 = vmax.f32 %v432_v57, 0.0  ;;  %v457_v6 = vrot.slane %v453_v63, 6  ;;  %2123 = vmatpush3.bf16.msra.mxu1 %v2411_v38  ;;  %v2741_v50 = vld [vmem:[%s3087_s2 + $0x30] ss:$8 sm:$0x3] }
 0x225   :  { %2124 = vmatprep.subr.bf16.mxu1 %v2412_v39  ;;  %v516_v53 = vrot.slane %v2741_v50, %v515_v49  ;;  %v519_v39 = vsub.s32 1, %v2518_v8  ;;  %v2461_v8 = vld [vmem:[%s3085_s1 + $0x470] ss:$8 sps:$4 sm:$0xff]  }
 0x226   :  { %v454_v0 = vmax.f32 %v450_v61, 0.0  ;;  %v448_v1 = vadd.f32 %v444_v62, %v283_v59  ;;  %v455_v3 = vrot.slane %v451_v60, 6 }
 0x228   :  { %v458_v4 = vrot.slane %v454_v0, 6  ;;  %v452_v5 = vmax.f32 %v448_v1, 0.0  ;;  %2125 = vmatpush3.bf16.msra.mxu1 %v2413_v40  ;;  %v708_v40 = vld [vmem:[%s3087_s2 + $0x40] ss:$0 sm:$0xff] }
 0x229   :  { %2126 = vmatprep.subr.bf16.mxu1 %v2414_v41 }
 0x22a   :  { %v456_v7 = vrot.slane %v452_v5, 6  ;;  %v463_v9 = vsel %vm459_vm6, %v458_v4, %v455_v3  ;;  %v460_v19 = vsel %vm459_vm6, %v457_v6, %v458_v4 }
 0x22b   :  { %v468_v10 = vsel %vm464_vm7, %v463_v9, 0.0 }
 0x22c   :  { %v462_v11 = vsel %vm459_vm6, %v455_v3, %v456_v7  ;;  %v461_v12 = vsel %vm459_vm6, %v456_v7, %v457_v6  ;;  %2127 = vmatpush3.bf16.msra.mxu1 %v2415_v42 }
 0x22d   :  { %v2357_v13 = vpack.i.bf16 %v462_v11, %v468_v10  ;;  %v470_v14 = vsel %vm466_vm8, %v461_v12, 0.0  ;;  %2128 = vmatprep.subr.bf16.mxu1 %v2416_v43 }
 0x22e   :  { %v2362_v20 = vpack.i.bf16 %v460_v19, %v470_v14  ;;  %v2424_v19 = vld [vmem:[%s3085_s1 + $0x300] ss:$8 sps:$4 sm:$0xff]  }
 0x22f   :  { %2358 = vrot.lane.b32.xlu1 %v2357_v13, %s2482_s16 }
 0x230   :  { %2129 = vmatpush3.bf16.msra.mxu1 %v2417_v44 }
 0x231   :  { %2130 = vmatprep.subr.bf16.mxu1 %v2418_v45 }
 0x233   :  { %2363 = vrot.lane.b32.xlu1 %v2362_v20, %s2482_s16  ;;  %v2425_v20 = vld [vmem:[%s3085_s1 + $0x280] ss:$8 sps:$4 sm:$0xff]  }
 0x234   :  { %2131 = vmatpush3.bf16.msra.mxu1 %v2419_v46  ;;  %v520_v46 = vrot.slane %v2741_v50, %v519_v39  ;;  %v2455_v39 = vld [vmem:[%s3085_s1 + $0x490] ss:$8 sps:$4 sm:$0xff]  }
 0x2a1   :  { %v2359_v24 = vpop.permute.xlu1 %2358 }
 0x2a2   :  { %v2361_v25 = vunpack.i.h.bf16 %v2359_v24  ;;  %v2360_v26 = vunpack.i.l.bf16 %v2359_v24  ;;  %v2428_v24 = vld [vmem:[%s3085_s1 + $0x2e0] ss:$8 sps:$4 sm:$0xff]  }
 0x2a4   :  { %v489_v27 = vsel %vm322_vm5, %v452_v5, %v2361_v25  ;;  %v488_v28 = vsel %vm322_vm5, %v451_v60, %v2360_v26  ;;  %v2429_v25 = vld [vmem:[%s3085_s1 + $0x260] ss:$8 sps:$4 sm:$0xff]   ;;  %v2430_v26 = vld [vmem:[%s3085_s1 + $0x2d0] ss:$8 sps:$4 sm:$0xff]  }
 0x2a5   :  { %v492_v29 = vpack.c.bf16 %v489_v27, %v488_v28  ;;  %v2364_v30 = vpop.permute.xlu1 %2363  ;;  %v2431_v27 = vld [vmem:[%s3085_s1 + $0x250] ss:$8 sps:$4 sm:$0xff]   ;;  %v2432_v28 = vld [vmem:[%s3085_s1 + $0x2c0] ss:$8 sps:$4 sm:$0xff]  }
 0x2a6   :  { %v2366_v31 = vunpack.i.h.bf16 %v2364_v30  ;;  %v2365_v32 = vunpack.i.l.bf16 %v2364_v30  ;;  %v2434_v30 = vld [vmem:[%s3085_s1 + $0x2b0] ss:$8 sps:$4 sm:$0xff]  }
 0x2a7   :  { %636 = vmatmul.mubr.bf16.vlgmr.msra.gmra.mxu0 %v492_v29  ;;  %v2433_v29 = vld [vmem:[%s3085_s1 + $0x240] ss:$8 sps:$4 sm:$0xff]  }
 0x2a8   :  { %645 = vmatprep.mubr.bf16.mxu0 %v2483_v2  ;;  %v490_v33 = vsel %vm322_vm5, %v453_v63, %v2365_v32  ;;  %v491_v34 = vsel %vm322_vm5, %v454_v0, %v2366_v31  ;;  %2145 = vmatpush3.bf16.msra.mxu0 %v2421_v16  ;;  %v2435_v31 = vld [vmem:[%s3085_s1 + $0x230] ss:$8 sps:$4 sm:$0xff]   ;;  %v2436_v32 = vld [vmem:[%s3085_s1 + $0x420] ss:$8 sps:$4 sm:$0xff]  }
 0x2a9   :  { %v493_v35 = vpack.c.bf16 %v491_v34, %v490_v33  ;;  %2146 = vmatprep.subr.bf16.mxu0 %v2422_v17  ;;  %v2437_v33 = vld [vmem:[%s3085_s1 + $0x3a0] ss:$8 sps:$4 sm:$0xff]   ;;  %v2438_v34 = vld [vmem:[%s3085_s1 + $0x410] ss:$8 sps:$4 sm:$0xff]   ;;  %2172 = vmatprep.subr.bf16.mxu1 %v2436_v32 }
 0x2aa   :  { %v2449_v32 = vld [vmem:[%s3085_s1 + $0x340] ss:$8 sps:$4 sm:$0xff]  }
 0x2ac   :  { %2147 = vmatpush3.bf16.msra.mxu0 %v2423_v18  ;;  %v2464_v18 = vld [vmem:[%s3085_s1 + $0x460] ss:$8 sps:$4 sm:$0xff]  }
 0x2ad   :  { %2148 = vmatprep.subr.bf16.mxu0 %v2424_v19 }
 0x2af   :  { %646 = vmatmul.mubr.bf16.gmra.mxu0 %v493_v35 }
 0x2b0   :  { %2149 = vmatpush3.bf16.msra.mxu0 %v2425_v20 }
 0x2b1   :  { %2150 = vmatprep.subr.bf16.mxu0 %v2426_v22  ;;  %v2439_v22 = vld [vmem:[%s3085_s1 + $0x390] ss:$8 sps:$4 sm:$0xff]  }
 0x2b4   :  { %2151 = vmatpush3.bf16.msra.mxu0 %v2427_v23  ;;  %v2440_v23 = vld [vmem:[%s3085_s1 + $0x400] ss:$8 sps:$4 sm:$0xff]  }
 0x2b5   :  { %2152 = vmatprep.subr.bf16.mxu0 %v2428_v24  ;;  %v2441_v24 = vld [vmem:[%s3085_s1 + $0x380] ss:$8 sps:$4 sm:$0xff]  }
 0x2b8   :  { %2153 = vmatpush3.bf16.msra.mxu0 %v2429_v25  ;;  %v2442_v25 = vld [vmem:[%s3085_s1 + $0x3f0] ss:$8 sps:$4 sm:$0xff]  }
 0x2b9   :  { %2154 = vmatprep.subr.bf16.mxu0 %v2430_v26  ;;  %v2443_v26 = vld [vmem:[%s3085_s1 + $0x370] ss:$8 sps:$4 sm:$0xff]  }
 0x2bc   :  { %2155 = vmatpush3.bf16.msra.mxu0 %v2431_v27  ;;  %v2444_v27 = vld [vmem:[%s3085_s1 + $0x3e0] ss:$8 sps:$4 sm:$0xff]  }
 0x2bd   :  { %2156 = vmatprep.subr.bf16.mxu0 %v2432_v28  ;;  %v2445_v28 = vld [vmem:[%s3085_s1 + $0x360] ss:$8 sps:$4 sm:$0xff]  }
 0x2c0   :  { %2157 = vmatpush3.bf16.msra.mxu0 %v2433_v29  ;;  %v2446_v29 = vld [vmem:[%s3085_s1 + $0x3d0] ss:$8 sps:$4 sm:$0xff]  }
 0x2c1   :  { %2158 = vmatprep.subr.bf16.mxu0 %v2434_v30  ;;  %v2447_v30 = vld [vmem:[%s3085_s1 + $0x350] ss:$8 sps:$4 sm:$0xff]  }
 0x2c4   :  { %2159 = vmatpush3.bf16.msra.mxu0 %v2435_v31  ;;  %v2448_v31 = vld [vmem:[%s3085_s1 + $0x3c0] ss:$8 sps:$4 sm:$0xff]  }
 0x367   :  { %v637_v48 = vpop.f32.mrf.mxu0 }
 0x368   :  { %v638_v57 = vadd.f32 %v637_v48, %v516_v53 }
 0x369   :  { %v2743_v51 = vpop.f32.mrf.mxu0 }
 0x36a   :  { %v656_v62 = vmax.f32 %v638_v57, 0.0  ;;  %v640_v57 = vadd.f32 %v2743_v51, %v520_v46 }
 0x36b   :  { %v641_v52 = vpop.f32.mrf.mxu0 }
 0x36c   :  { %v642_v55 = vadd.f32 %v641_v52, %v516_v53  ;;  %v660_v3 = vrot.slane %v656_v62, 6 }
 0x36d   :  { %v2746_v54 = vpop.f32.mrf.mxu0 }
 0x36e   :  { %v657_v60 = vmax.f32 %v642_v55, 0.0 }
 0x36f   :  { %v647_v56 = vpop.f32.mrf.mxu0 }
 0x370   :  { %v648_v58 = vadd.f32 %v647_v56, %v516_v53  ;;  %v661_v1 = vrot.slane %v657_v60, 6  ;;  %v672_v11 = vpack.c.bf16 %v657_v60, %v656_v62 }
 0x371   :  { %v2748_v59 = vpop.f32.mrf.mxu0 }
 0x372   :  { %v658_v63 = vmax.f32 %v648_v58, 0.0  ;;  %v666_v6 = vsel %vm459_vm6, %v660_v3, %v661_v1  ;;  %v650_v60 = vadd.f32 %v2748_v59, %v520_v46 }
 0x373   :  { %v651_v61 = vpop.f32.mrf.mxu0 }
 0x374   :  { %v652_v0 = vadd.f32 %v651_v61, %v516_v53  ;;  %v662_v4 = vrot.slane %v658_v63, 6  ;;  %v644_v53 = vadd.f32 %v2746_v54, %v520_v46 }
 0x376   :  { %v659_v2 = vmax.f32 %v652_v0, 0.0  ;;  %v665_v12 = vsel %vm459_vm6, %v661_v1, %v662_v4  ;;  %v653_v0 = vpop.f32.mrf.mxu0 }
 0x378   :  { %v663_v5 = vrot.slane %v659_v2, 6  ;;  %v674_v14 = vpack.c.bf16 %v659_v2, %v658_v63 }
 0x37a   :  { %v664_v7 = vsel %vm459_vm6, %v662_v4, %v663_v5  ;;  %v667_v9 = vsel %vm459_vm6, %v663_v5, %v660_v3  ;;  %v654_v3 = vadd.f32 %v653_v0, %v520_v46 }
 0x37b   :  { %v2010_v10 = vpack.c.bf16 %v666_v6, %v667_v9  ;;  %v2013_v13 = vpack.c.bf16 %v664_v7, %v665_v12 }
 0x37d   :  { %2011 = vmatprep.mubr.msk.bf16.mxu1 %vm2009_vm10, %v2010_v10 }
 0x37e   :  { %838 = vmatmul.mubr.bf16.vlgmr.msra.gmra.mxu1 %v672_v11 }
 0x37f   :  { %2014 = vmatprep.mubr.msk.bf16.mxu1 %vm2012_vm11, %v2013_v13  ;;  %2173 = vmatpush3.bf16.msra.mxu1 %v2437_v33  ;;  %v2450_v33 = vld [vmem:[%s3085_s1 + $0x3b0] ss:$8 sps:$4 sm:$0xff]  }
 0x380   :  { %2174 = vmatprep.subr.bf16.mxu1 %v2438_v34  ;;  %v2451_v34 = vld [vmem:[%s3085_s1 + $0x330] ss:$8 sps:$4 sm:$0xff]  }
 0x383   :  { %2175 = vmatpush3.bf16.msra.mxu1 %v2439_v22  ;;  %v2466_v22 = vld [vmem:[%s3085_s1 + $0x590] ss:$8 sps:$4 sm:$0xff]  }
 0x384   :  { %2176 = vmatprep.subr.bf16.mxu1 %v2440_v23  ;;  %v2467_v23 = vld [vmem:[%s3085_s1 + $0x450] ss:$8 sps:$4 sm:$0xff]  }
 0x386   :  { %846 = vmatmul.mubr.bf16.gmra.mxu1 %v674_v14  ;;  %v2462_v14 = vld [vmem:[%s3085_s1 + $0x4e0] ss:$8 sps:$4 sm:$0xff]  }
 0x387   :  { %2177 = vmatpush3.bf16.msra.mxu1 %v2441_v24  ;;  %v2468_v24 = vld [vmem:[%s3085_s1 + $0x4c0] ss:$8 sps:$4 sm:$0xff]  }
 0x388   :  { %2178 = vmatprep.subr.bf16.mxu1 %v2442_v25  ;;  %v2469_v25 = vld [vmem:[%s3085_s1 + $0x580] ss:$8 sps:$4 sm:$0xff]  }
 0x38b   :  { %2179 = vmatpush3.bf16.msra.mxu1 %v2443_v26  ;;  %v2470_v26 = vld [vmem:[%s3085_s1 + $0x440] ss:$8 sps:$4 sm:$0xff]  }
 0x38c   :  { %2180 = vmatprep.subr.bf16.mxu1 %v2444_v27  ;;  %v2471_v27 = vld [vmem:[%s3085_s1 + $0x4b0] ss:$8 sps:$4 sm:$0xff]  }
 0x38f   :  { %2181 = vmatpush3.bf16.msra.mxu1 %v2445_v28  ;;  %v2472_v28 = vld [vmem:[%s3085_s1 + $0x570] ss:$8 sps:$4 sm:$0xff]  }
 0x390   :  { %2182 = vmatprep.subr.bf16.mxu1 %v2446_v29  ;;  %v2473_v29 = vld [vmem:[%s3085_s1 + $0x430] ss:$8 sps:$4 sm:$0xff]  }
 0x393   :  { %2183 = vmatpush3.bf16.msra.mxu1 %v2447_v30  ;;  %v2474_v30 = vld [vmem:[%s3085_s1 + $0x560] ss:$8 sps:$4 sm:$0xff]  }
 0x394   :  { %2184 = vmatprep.subr.bf16.mxu1 %v2448_v31  ;;  %v2475_v31 = vld [vmem:[%s3085_s1 + $0x550] ss:$8 sps:$4 sm:$0xff]  }
 0x397   :  { %2185 = vmatpush3.bf16.msra.mxu1 %v2449_v32 }
 0x398   :  { %2186 = vmatprep.subr.bf16.mxu1 %v2450_v33  ;;  %v1117_v33 = vld [vmem:[%s3087_s2 + $0x60] ss:$0 sm:$0xff] }
 0x39b   :  { %2187 = vmatpush3.bf16.msra.mxu1 %v2451_v34 }
 0x43e   :  { %v2132_v35 = vpop.f32.mrf.mxu1 }
 0x440   :  { %v2133_v36 = vpop.f32.mrf.mxu1 }
 0x441   :  { %v2134_v38 = vadd.f32 %v2133_v36, %v2132_v35  ;;  %v2452_v35 = vld [vmem:[%s3085_s1 + $0x520] ss:$8 sps:$4 sm:$0xff]  }
 0x442   :  { %v2135_v37 = vpop.f32.mrf.mxu1  ;;  %v2453_v36 = vld [vmem:[%s3085_s1 + $0x4a0] ss:$8 sps:$4 sm:$0xff]   ;;  %2200 = vmatprep.subr.bf16.mxu0 %v2452_v35 }
 0x443   :  { %v840_v44 = vadd.f32 %v2134_v38, %v708_v40  ;;  %v2457_v38 = vld [vmem:[%s3085_s1 + $0x5c0] ss:$8 sps:$4 sm:$0xff]  }
 0x444   :  { %v2136_v41 = vpop.f32.mrf.mxu1  ;;  %2290 = vmatprep.subr.bf16.mxu1 %v2457_v38 }
 0x445   :  { %v2137_v42 = vadd.f32 %v2136_v41, %v2135_v37  ;;  %v854_v55 = vmax.f32 %v840_v44, 0.0  ;;  %v2454_v37 = vld [vmem:[%s3085_s1 + $0x510] ss:$8 sps:$4 sm:$0xff]   ;;  %v2458_v41 = vld [vmem:[%s3085_s1 + $0x480] ss:$8 sps:$4 sm:$0xff]  }
 0x446   :  { %v2138_v43 = vpop.f32.mrf.mxu1 }
 0x447   :  { %v843_v45 = vadd.f32 %v2137_v42, %v708_v40  ;;  %v858_v1 = vadd.f32 %v854_v55, %v640_v57  ;;  %v2459_v42 = vld [vmem:[%s3085_s1 + $0x4f0] ss:$8 sps:$4 sm:$0xff]  }
 0x448   :  { %v2139_v47 = vpop.f32.mrf.mxu1 }
 0x449   :  { %v855_v48 = vmax.f32 %v843_v45, 0.0  ;;  %v2140_v49 = vadd.f32 %v2139_v47, %v2138_v43  ;;  %v2828_v6 = vmax.f32 %v858_v1, 0.0 }
 0x44a   :  { %v2141_v52 = vpop.f32.mrf.mxu1 }
 0x44b   :  { %v848_v56 = vadd.f32 %v2140_v49, %v708_v40  ;;  %v859_v61 = vadd.f32 %v855_v48, %v644_v53  ;;  %v866_v59 = vrot.slane %v2828_v6, 4 }
 0x44c   :  { %v2142_v58 = vpop.f32.mrf.mxu1 }
 0x44d   :  { %v856_v62 = vmax.f32 %v848_v56, 0.0  ;;  %v2143_v63 = vadd.f32 %v2142_v58, %v2141_v52  ;;  %v2826_v4 = vmax.f32 %v859_v61, 0.0  ;;  %v919_v52 = vld [vmem:[%s3087_s2 + $0x50] ss:$0 sm:$0xff] }
 0x44f   :  { %v860_v2 = vadd.f32 %v856_v62, %v650_v60  ;;  %v851_v50 = vadd.f32 %v2143_v63, %v708_v40  ;;  %v867_v51 = vrot.slane %v2826_v4, 4  ;;  %v883_v17 = vpack.c.bf16 %v2826_v4, %v2828_v6  ;;  %v2456_v40 = vld [vmem:[%s3085_s1 + $0x500] ss:$8 sps:$4 sm:$0xff]  }
 0x451   :  { %v857_v5 = vmax.f32 %v851_v50, 0.0  ;;  %v2830_v54 = vmax.f32 %v860_v2, 0.0  ;;  %v873_v12 = vsel %vm870_vm12, %v866_v59, %v867_v51 }
 0x453   :  { %v861_v7 = vadd.f32 %v857_v5, %v654_v3  ;;  %v868_v10 = vrot.slane %v2830_v54, 4 }
 0x455   :  { %v2833_v9 = vmax.f32 %v861_v7, 0.0  ;;  %v872_v21 = vsel %vm870_vm12, %v867_v51, %v868_v10 }
 0x457   :  { %v869_v11 = vrot.slane %v2833_v9, 4  ;;  %v885_v20 = vpack.c.bf16 %v2833_v9, %v2830_v54 }
 0x459   :  { %v874_v13 = vsel %vm870_vm12, %v869_v11, %v866_v59  ;;  %v871_v15 = vsel %vm870_vm12, %v868_v10, %v869_v11 }
 0x45a   :  { %v2032_v16 = vpack.c.bf16 %v873_v12, %v874_v13  ;;  %v2035_v19 = vpack.c.bf16 %v871_v15, %v872_v21 }
 0x45c   :  { %2033 = vmatprep.mubr.msk.bf16.mxu0 %vm2846_vm15, %v2032_v16  ;;  %v2460_v16 = vld [vmem:[%s3085_s1 + $0x5b0] ss:$8 sps:$4 sm:$0xff]  }
 0x45d   :  { %1049 = vmatmul.mubr.bf16.vlgmr.msra.gmra.mxu0 %v883_v17 }
 0x45e   :  { %2036 = vmatprep.mubr.msk.bf16.mxu0 %vm2857_vm2, %v2035_v19  ;;  %2201 = vmatpush3.bf16.msra.mxu0 %v2453_v36  ;;  %v2463_v19 = vld [vmem:[%s3085_s1 + $0x5a0] ss:$8 sps:$4 sm:$0xff]  }
 0x45f   :  { %2202 = vmatprep.subr.bf16.mxu0 %v2454_v37 }
 0x462   :  { %2203 = vmatpush3.bf16.msra.mxu0 %v2455_v39 }
 0x463   :  { %2204 = vmatprep.subr.bf16.mxu0 %v2456_v40 }
 0x465   :  { %1057 = vmatmul.mubr.bf16.gmra.mxu0 %v885_v20  ;;  %v2465_v20 = vld [vmem:[%s3085_s1 + $0x4d0] ss:$8 sps:$4 sm:$0xff]  }
 0x466   :  { %2205 = vmatpush3.bf16.msra.mxu0 %v2458_v41 }
 0x467   :  { %2206 = vmatprep.subr.bf16.mxu0 %v2459_v42 }
 0x46a   :  { %2207 = vmatpush3.bf16.msra.mxu0 %v2461_v8 }
 0x46b   :  { %2208 = vmatprep.subr.bf16.mxu0 %v2462_v14 }
 0x46e   :  { %2209 = vmatpush3.bf16.msra.mxu0 %v2464_v18 }
 0x46f   :  { %2210 = vmatprep.subr.bf16.mxu0 %v2465_v20 }
 0x472   :  { %2211 = vmatpush3.bf16.msra.mxu0 %v2467_v23 }
 0x473   :  { %2212 = vmatprep.subr.bf16.mxu0 %v2468_v24 }
 0x476   :  { %2213 = vmatpush3.bf16.msra.mxu0 %v2470_v26 }
 0x477   :  { %2214 = vmatprep.subr.bf16.mxu0 %v2471_v27 }
 0x47a   :  { %2215 = vmatpush3.bf16.msra.mxu0 %v2473_v29 }
 0x51d   :  { %v2160_v43 = vpop.f32.mrf.mxu0 }
 0x51f   :  { %v2161_v44 = vpop.f32.mrf.mxu0 }
 0x520   :  { %v2162_v49 = vadd.f32 %v2161_v44, %v2160_v43 }
 0x521   :  { %v2163_v45 = vpop.f32.mrf.mxu0 }
 0x522   :  { %v1051_v58 = vadd.f32 %v2162_v49, %v919_v52 }
 0x523   :  { %v2164_v46 = vpop.f32.mrf.mxu0 }
 0x524   :  { %v2165_v47 = vadd.f32 %v2164_v46, %v2163_v45  ;;  %v1065_v0 = vmax.f32 %v1051_v58, 0.0 }
 0x525   :  { %v2166_v48 = vpop.f32.mrf.mxu0 }
 0x526   :  { %v1054_v55 = vadd.f32 %v2165_v47, %v919_v52  ;;  %v1069_v5 = vrot.slane %v1065_v0, 4 }
 0x527   :  { %v2167_v53 = vpop.f32.mrf.mxu0 }
 0x528   :  { %v2168_v56 = vadd.f32 %v2167_v53, %v2166_v48  ;;  %v1066_v62 = vmax.f32 %v1054_v55, 0.0  ;;  %v2485_v53 = vmov 0.0  }
 0x529   :  { %v2169_v57 = vpop.f32.mrf.mxu0 }
 0x52a   :  { %v1059_v60 = vadd.f32 %v2168_v56, %v919_v52  ;;  %v1070_v50 = vrot.slane %v1066_v62, 4  ;;  %v1081_v13 = vpack.c.bf16 %v1066_v62, %v1065_v0 }
 0x52b   :  { %v2170_v61 = vpop.f32.mrf.mxu0 }
 0x52c   :  { %v2171_v63 = vadd.f32 %v2170_v61, %v2169_v57  ;;  %v1067_v1 = vmax.f32 %v1059_v60, 0.0  ;;  %v1075_v59 = vsel %vm870_vm12, %v1069_v5, %v1070_v50 }
 0x52e   :  { %v1062_v2 = vadd.f32 %v2171_v63, %v919_v52  ;;  %v1071_v7 = vrot.slane %v1067_v1, 4 }
 0x530   :  { %v1068_v3 = vmax.f32 %v1062_v2, 0.0  ;;  %v1074_v15 = vsel %vm870_vm12, %v1070_v50, %v1071_v7 }
 0x532   :  { %v1072_v51 = vrot.slane %v1068_v3, 4  ;;  %v1083_v21 = vpack.c.bf16 %v1068_v3, %v1067_v1  ;;  %v2476_v3 = vld [vmem:[%s3085_s1 + $0x540] ss:$8 sps:$4 sm:$0x3f]  }
 0x533   :  { %2341 = vmatprep.subr.msk.bf16.mxu0 %vm109_vm0, %v2476_v3 }
 0x534   :  { %v1076_v10 = vsel %vm870_vm12, %v1072_v51, %v1069_v5  ;;  %v1073_v11 = vsel %vm870_vm12, %v1071_v7, %v1072_v51  ;;  %v2477_v5 = vld [vmem:[%s3085_s1 + $0x530] ss:$8 sps:$4 sm:$0x3f]  }
 0x535   :  { %v2054_v12 = vpack.c.bf16 %v1075_v59, %v1076_v10  ;;  %v2057_v17 = vpack.c.bf16 %v1073_v11, %v1074_v15  ;;  %v1319_v7 = vld [vmem:[%s3087_s2 + $0x70] ss:$0 sm:$0xff]  ;;  %v1670_v27 = vsel %vm109_vm0, %v2477_v5, 0 }
 0x537   :  { %2055 = vmatprep.mubr.msk.bf16.mxu1 %vm2846_vm15, %v2054_v12 }
 0x538   :  { %1247 = vmatmul.mubr.bf16.vlgmr.msra.gmra.mxu1 %v1081_v13 }
 0x539   :  { %2058 = vmatprep.mubr.msk.bf16.mxu1 %vm2857_vm2, %v2057_v17  ;;  %2291 = vmatpush3.bf16.msra.mxu1 %v2457_v38 }
 0x53a   :  { %2292 = vmatprep.subr.bf16.mxu1 %v2460_v16 }
 0x53d   :  { %2293 = vmatpush3.bf16.msra.mxu1 %v2460_v16 }
 0x53e   :  { %2294 = vmatprep.subr.bf16.mxu1 %v2463_v19 }
 0x540   :  { %1255 = vmatmul.mubr.bf16.gmra.mxu1 %v1083_v21 }
 0x541   :  { %2295 = vmatpush3.bf16.msra.mxu1 %v2463_v19 }
 0x542   :  { %2296 = vmatprep.subr.bf16.mxu1 %v2466_v22 }
 0x545   :  { %2297 = vmatpush3.bf16.msra.mxu1 %v2466_v22 }
 0x546   :  { %2298 = vmatprep.subr.bf16.mxu1 %v2469_v25 }
 0x549   :  { %2299 = vmatpush3.bf16.msra.mxu1 %v2469_v25 }
 0x54a   :  { %2300 = vmatprep.subr.bf16.mxu1 %v2472_v28 }
 0x54d   :  { %2301 = vmatpush3.bf16.msra.mxu1 %v2472_v28 }
 0x54e   :  { %2302 = vmatprep.subr.bf16.mxu1 %v2474_v30 }
 0x551   :  { %2303 = vmatpush3.bf16.msra.mxu1 %v2474_v30 }
 0x552   :  { %2304 = vmatprep.subr.bf16.mxu1 %v2475_v31 }
 0x555   :  { %2305 = vmatpush3.bf16.msra.mxu1 %v2475_v31  ;;  %v2478_v31 = vld [vmem:[%s3085_s1 + $0x5d0] ss:$8 sps:$4 sm:$0xff]  }
 0x5f8   :  { %v2188_v32 = vpop.f32.mrf.mxu1 }
 0x5fa   :  { %v2189_v34 = vpop.f32.mrf.mxu1 }
 0x5fb   :  { %v2190_v35 = vadd.f32 %v2189_v34, %v2188_v32  ;;  %v1746_v32 = vld [vmem:[%s3087_s2 + $0xc0] sm:$0xff]  ;;  %v1745_v34 = vld [vmem:[%s3087_s2 + $0xb0] sm:$0xff] }
 0x5fc   :  { %v2191_v36 = vpop.f32.mrf.mxu1  ;;  %1760 = vperm.xlu0 %2367, %v1746_v32  }
 0x5fd   :  { %v1249_v37 = vadd.f32 %v2190_v35, %v1117_v33  ;;  %v1744_v35 = vld [vmem:[%s3087_s2 + $0xa0] sm:$0xff] }
 0x5fe   :  { %v2192_v38 = vpop.f32.mrf.mxu1 }
 0x5ff   :  { %v1263_v39 = vmax.f32 %v1249_v37, 0.0  ;;  %v2193_v40 = vadd.f32 %v2192_v38, %v2191_v36  ;;  %v1863_v36 = vld [vmem:[%s3087_s2 + $0x110] sm:$0xff]  ;;  %v1862_v37 = vld [vmem:[%s3087_s2 + $0x100] sm:$0xff] }
 0x600   :  { %v2194_v41 = vpop.f32.mrf.mxu1  ;;  %1755 = vperm.xlu0 %2367, %v1745_v34   ;;  %v1865_v38 = vld [vmem:[%s3087_s2 + $0x130] sm:$0xff] }
 0x601   :  { %v1267_v42 = vadd.f32 %v1263_v39, %v2828_v6  ;;  %v1252_v43 = vadd.f32 %v2193_v40, %v1117_v33  ;;  %v1864_v39 = vld [vmem:[%s3087_s2 + $0x120] sm:$0xff] }
 0x602   :  { %v2195_v44 = vpop.f32.mrf.mxu1 }
 0x603   :  { %v1271_v45 = vmax.f32 %v1267_v42, 0.0  ;;  %v1264_v46 = vmax.f32 %v1252_v43, 0.0  ;;  %v2196_v47 = vadd.f32 %v2195_v44, %v2194_v41 }
 0x604   :  { %v2197_v48 = vpop.f32.mrf.mxu1  ;;  %1873 = vperm.xlu0 %2367, %v1863_v36  }
 0x605   :  { %v1268_v49 = vadd.f32 %v1264_v46, %v2826_v4  ;;  %v1257_v52 = vadd.f32 %v2196_v47, %v1117_v33  ;;  %v1284_v55 = vpack.c.bf16 %v1271_v45, %v2485_v53  ;;  %v1721_v47 = vld [vmem:[%s3087_s2 + $0x80] ss:$0 sm:$0xff] }
 0x606   :  { %v2198_v56 = vpop.f32.mrf.mxu1 }
 0x607   :  { %v1272_v57 = vmax.f32 %v1268_v49, 0.0  ;;  %v1265_v58 = vmax.f32 %v1257_v52, 0.0  ;;  %v2199_v60 = vadd.f32 %v2198_v56, %v2197_v48  ;;  %1448 = vmatprep.mubr.bf16.mxu0 %v1284_v55  ;;  %v1485_v55 = vld [vmem:[%s3087_s2 + $0x90] ss:$0 sm:$0xff] }
 0x608   :  { %1883 = vperm.xlu0 %2367, %v1865_v38  }
 0x609   :  { %v1283_v61 = vpack.c.bf16 %v1272_v57, %v1271_v45  ;;  %v1269_v62 = vadd.f32 %v1265_v58, %v2830_v54  ;;  %v1260_v6 = vadd.f32 %v2199_v60, %v1117_v33  ;;  %v1607_v54 = vsel %vm109_vm0, %v2476_v3, 0  ;;  %v1747_v33 = vld [vmem:[%s3087_s2 + $0xd0] sm:$0xff] }
 0x60a   :  { %1765 = vperm.xlu1 %2368, %v1747_v33  }
 0x60b   :  { %v1273_v63 = vmax.f32 %v1269_v62, 0.0  ;;  %v1266_v0 = vmax.f32 %v1260_v6, 0.0  ;;  %1449 = vmatmul.mubr.bf16.vlgmr.msra.gmra.mxu0 %v1283_v61  ;;  %2306 = vmatprep.mubr.bf16.mxu1 %v1283_v61 }
 0x60c   :  { %2311 = vmatpush3.bf16.msra.mxu0 %v1607_v54 }
 0x60d   :  { %v1270_v1 = vadd.f32 %v1266_v0, %v2833_v9  ;;  %v1286_v2 = vpack.c.bf16 %v1273_v63, %v2485_v53  ;;  %2342 = vmatprep.subr.msk.bf16.mxu0 %vm109_vm0, %v2477_v5 }
 0x60e   :  { %1750 = vperm.xlu1 %2368, %v1744_v35  }
 0x60f   :  { %v1274_v4 = vmax.f32 %v1270_v1, 0.0  ;;  %1456 = vmatprep.mubr.bf16.mxu0 %v1286_v2 }
 0x611   :  { %v1285_v50 = vpack.c.bf16 %v1274_v4, %v1273_v63 }
 0x612   :  { %1868 = vperm.xlu1 %2368, %v1862_v37  }
 0x613   :  { %1457 = vmatmul.mubr.bf16.gmra.mxu0 %v1285_v50  ;;  %2307 = vmatmul.mubr.bf16.vlgmr.msra.gmra.mxu1 %v1285_v50 }
 0x616   :  { %1878 = vperm.xlu1 %2368, %v1864_v39   ;;  %v1851_v39 = vld [vmem:[%s3087_s2 + $0xf0] ss:$0 sm:$0xff] }
 0x6cb   :  { %v2216_v9 = vpop.f32.mrf.mxu0 }
 0x6cd   :  { %v2217_v51 = vpop.f32.mrf.mxu0 }
 0x6ce   :  { %v2218_v59 = vadd.f32 %v2217_v51, %v2216_v9 }
 0x6cf   :  { %v2219_v10 = vpop.f32.mrf.mxu0 }
 0x6d0   :  { %v1451_v11 = vadd.f32 %v2218_v59, %v1319_v7 }
 0x6d1   :  { %v2220_v12 = vpop.f32.mrf.mxu0 }
 0x6d2   :  { %v1465_v13 = vmax.f32 %v1451_v11, 0.0  ;;  %v2221_v15 = vadd.f32 %v2220_v12, %v2219_v10 }
 0x6d3   :  { %v2222_v16 = vpop.f32.mrf.mxu0  ;;  %v2308_v42 = vpop.f32.mrf.mxu1 }
 0x6d4   :  { %v1591_v17 = vpack.c.bf16 %v1465_v13, %v2485_v53  ;;  %v1454_v21 = vadd.f32 %v2221_v15, %v1319_v7  ;;  %v1577_v6 = vadd.f32 %v2308_v42, %v1485_v55 }
 0x6d5   :  { %v2223_v8 = vpop.f32.mrf.mxu0  ;;  %v1568_v45 = vpop.f32.mrf.mxu1 }
 0x6d6   :  { %v2224_v14 = vadd.f32 %v2223_v8, %v2222_v16  ;;  %2312 = vmatprep.mubr.msk.bf16.mxu0 %vm102_vm1, %v1591_v17  ;;  %v1466_v20 = vmax.f32 %v1454_v21, 0.0  ;;  %v1569_v2 = vadd.f32 %v1568_v45, %v1485_v55  ;;  %v2479_v21 = vld [vmem:[%s3085_s1 + $0x5e0] ss:$8 sps:$4 sm:$0xff]   ;;  %v2480_v8 = vld [vmem:[%s3085_s1 + $0x5f0] ss:$8 sps:$4 sm:$0xff]  }
 0x6d7   :  { %v2225_v19 = vpop.f32.mrf.mxu0  ;;  %v2309_v56 = vpop.f32.mrf.mxu1  ;;  %2334 = vmatprep.mubr.msk.bf16.mxu1 %vm1778_vm3, %v2480_v8 }
 0x6d8   :  { %v1459_v18 = vadd.f32 %v2224_v14, %v1319_v7  ;;  %v1587_v28 = vpack.c.bf16 %v1466_v20, %v1465_v13  ;;  %v1580_v50 = vadd.f32 %v2309_v56, %v1485_v55  ;;  %v1766_v14 = vpop.permute.xlu1 %1765 }
 0x6d9   :  { %v2226_v22 = vpop.f32.mrf.mxu0  ;;  %v1571_v4 = vpop.f32.mrf.mxu1 }
 0x6da   :  { %v1467_v23 = vmax.f32 %v1459_v18, 0.0  ;;  %v2227_v24 = vadd.f32 %v2226_v22, %v2225_v19  ;;  %v1572_v9 = vadd.f32 %v1571_v4, %v1485_v55  ;;  %v1761_v19 = vpop.permute.xlu0 %1760 }
 0x6dc   :  { %v1592_v25 = vpack.c.bf16 %v1467_v23, %v2485_v53  ;;  %v1462_v26 = vadd.f32 %v2227_v24, %v1319_v7  ;;  %v1751_v22 = vpop.permute.xlu1 %1750 }
 0x6de   :  { %2313 = vmatmul.mubr.msk.bf16.vlgmr.msra.gmra.mxu0 %vm102_vm1, %v1592_v25  ;;  %v1468_v29 = vmax.f32 %v1462_v26, 0.0 }
 0x6df   :  { %2317 = vmatpush3.bf16.msra.mxu0 %v1670_v27  ;;  %2318 = vmatprep.mubr.msk.bf16.mxu0 %vm102_vm1, %v1587_v28  ;;  %v1846_v28 = vld [vmem:[%s3087_s2 + $0xe0] ss:$0 sm:$0xff] }
 0x6e0   :  { %v1588_v30 = vpack.c.bf16 %v1468_v29, %v1467_v23 }
 0x6e6   :  { %2319 = vmatmul.mubr.msk.bf16.vlgmr.msra.gmra.mxu0 %vm102_vm1, %v1588_v30 }
 0x6e7   :  { %2326 = vmatprep.mubr.msk.bf16.mxu0 %vm1778_vm3, %v2478_v31  ;;  %v1756_v31 = vpop.permute.xlu0 %1755 }
 0x6eb   :  { %v1874_v55 = vpop.permute.xlu0 %1873 }
 0x79e   :  { %v2314_v40 = vpop.f32.mrf.mxu0 }
 0x7a0   :  { %v1643_v41 = vpop.f32.mrf.mxu0 }
 0x7a2   :  { %v2315_v43 = vpop.f32.mrf.mxu0 }
 0x7a4   :  { %v1646_v44 = vpop.f32.mrf.mxu0 }
 0x7a6   :  { %v2320_v46 = vpop.f32.mrf.mxu0 }
 0x7a7   :  { %v1715_v48 = vadd.f32 %v2320_v46, %v2314_v40 }
 0x7a8   :  { %v1706_v49 = vpop.f32.mrf.mxu0 }
 0x7a9   :  { %v1724_v52 = vadd.f32 %v1721_v47, %v1715_v48  ;;  %v1707_v53 = vadd.f32 %v1706_v49, %v1643_v41 }
 0x7aa   :  { %v2321_v57 = vpop.f32.mrf.mxu0 }
 0x7ab   :  { %v1728_v58 = vmax.f32 %v1724_v52, 0.0  ;;  %v1722_v60 = vadd.f32 %v1721_v47, %v1707_v53  ;;  %v1718_v61 = vadd.f32 %v2321_v57, %v2315_v43  ;;  %v2481_v52 = vld [vmem:[%s3085_s1 + $0x600] ss:$8 sps:$4 sm:$0xff]   ;;  %v1869_v53 = vpop.permute.xlu1 %1868 }
 0x7ac   :  { %v1709_v62 = vpop.f32.mrf.mxu0 }
 0x7ad   :  { %v1726_v63 = vmax.f32 %v1722_v60, 0.0  ;;  %v1725_v0 = vadd.f32 %v1721_v47, %v1718_v61  ;;  %v1710_v1 = vadd.f32 %v1709_v62, %v1646_v44  ;;  %v1732_v3 = vadd.f32 %v1728_v58, %v1577_v6  ;;  %v1884_v62 = vpop.permute.xlu0 %1883 }
 0x7af   :  { %v1729_v54 = vmax.f32 %v1725_v0, 0.0  ;;  %v1723_v5 = vadd.f32 %v1721_v47, %v1710_v1  ;;  %v1730_v7 = vadd.f32 %v1726_v63, %v1569_v2  ;;  %v1736_v10 = vmax.f32 %v1732_v3, 0.0  ;;  %v1879_v56 = vpop.permute.xlu1 %1878 }
 0x7b1   :  { %v1733_v51 = vadd.f32 %v1729_v54, %v1580_v50  ;;  %v1727_v59 = vmax.f32 %v1723_v5, 0.0  ;;  %v1734_v13 = vmax.f32 %v1730_v7, 0.0 }
 0x7b3   :  { %v1737_v11 = vmax.f32 %v1733_v51, 0.0  ;;  %v1731_v12 = vadd.f32 %v1727_v59, %v1572_v9 }
 0x7b5   :  { %v1735_v15 = vmax.f32 %v1731_v12, 0.0  ;;  %v1743_v16 = vpack.c.bf16 %v1737_v11, %v1736_v10 }
 0x7b7   :  { %2322 = vmatprep.subr.bf16.mxu0 %v1743_v16  ;;  %v1742_v17 = vpack.c.bf16 %v1735_v15, %v1734_v13 }
 0x7b8   :  { %2323 = vmatpush3.bf16.msra.mxu0 %v1743_v16 }
 0x7b9   :  { %2324 = vmatprep.subr.bf16.mxu0 %v1742_v17 }
 0x7bc   :  { %2325 = vmatpush3.bf16.msra.mxu0 %v1742_v17 }
 0x7bf   :  { %2327 = vmatmul.mubr.msk.bf16.vlgmr.msra.gmra.mxu0 %vm1778_vm3, %v2479_v21 }
 0x87f   :  { %v2328_v18 = vpop.f32.mrf.mxu0 }
 0x880   :  { %v1828_v20 = vadd.f32 %v2328_v18, %v1761_v19 }
 0x881   :  { %v1819_v23 = vpop.f32.mrf.mxu0 }
 0x882   :  { %vm1836_vm0 = vcmp.gt.f32.partialorder %v1828_v20, 0.0  ;;  %v1840_v24 = vmul.f32 0.01, %v1828_v20  ;;  %v1820_v25 = vadd.f32 %v1819_v23, %v1751_v22 }
 0x883   :  { %v2329_v26 = vpop.f32.mrf.mxu0 }
 0x884   :  { %v1844_v27 = vsel %vm1836_vm0, %v1828_v20, %v1840_v24  ;;  %vm1834_vm4 = vcmp.gt.f32.partialorder %v1820_v25, 0.0  ;;  %v1838_v29 = vmul.f32 0.01, %v1820_v25  ;;  %v1831_v30 = vadd.f32 %v2329_v26, %v1766_v14 }
 0x885   :  { %v1822_v32 = vpop.f32.mrf.mxu0  ;;  %v1849_v36 = vmul.f32 %v1846_v28, %v1844_v27 }
 0x886   :  { %v1842_v33 = vsel %vm1834_vm4, %v1820_v25, %v1838_v29  ;;  %vm1837_vm5 = vcmp.gt.f32.partialorder %v1831_v30, 0.0  ;;  %v1841_v34 = vmul.f32 0.01, %v1831_v30  ;;  %v1823_v35 = vadd.f32 %v1822_v32, %v1756_v31 }
 0x887   :  { %v1847_v40 = vmul.f32 %v1846_v28, %v1842_v33  ;;  %v1854_v44 = vadd.f32 %v1851_v39, %v1849_v36 }
 0x888   :  { %v1845_v37 = vsel %vm1837_vm5, %v1831_v30, %v1841_v34  ;;  %vm1835_vm6 = vcmp.gt.f32.partialorder %v1823_v35, 0.0  ;;  %v1839_v38 = vmul.f32 0.01, %v1823_v35 }
 0x889   :  { %v1850_v41 = vmul.f32 %v1846_v28, %v1845_v37  ;;  %v1852_v47 = vadd.f32 %v1851_v39, %v1847_v40 }
 0x88a   :  { %v1843_v42 = vsel %vm1835_vm6, %v1823_v35, %v1839_v38 }
 0x88b   :  { %v1848_v43 = vmul.f32 %v1846_v28, %v1843_v42  ;;  %v1855_v45 = vadd.f32 %v1851_v39, %v1850_v41 }
 0x88d   :  { %v1861_v46 = vpack.c.bf16 %v1855_v45, %v1854_v44  ;;  %v1853_v48 = vadd.f32 %v1851_v39, %v1848_v43 }
 0x88f   :  { %2330 = vmatprep.subr.bf16.mxu1 %v1861_v46  ;;  %v1860_v49 = vpack.c.bf16 %v1853_v48, %v1852_v47 }
 0x890   :  { %2331 = vmatpush3.bf16.msra.mxu1 %v1861_v46 }
 0x891   :  { %2332 = vmatprep.subr.bf16.mxu1 %v1860_v49 }
 0x894   :  { %2333 = vmatpush3.bf16.msra.mxu1 %v1860_v49 }
 0x897   :  { %2335 = vmatmul.mubr.msk.bf16.vlgmr.msra.gmra.mxu1 %vm1778_vm3, %v2481_v52 }
 0x957   :  { %v2336_v57 = vpop.f32.mrf.mxu1 }
 0x958   :  { %v1945_v58 = vadd.f32 %v2336_v57, %v1879_v56 }
 0x959   :  { %v1936_v60 = vpop.f32.mrf.mxu1 }
 0x95a   :  { %1953 = vst.msk [vmem:[%s3088_s3 + $0x10] sm:$0xff] %vm102_vm1, %v1945_v58  ;;  %v1937_v61 = vadd.f32 %v1936_v60, %v1869_v53 }
 0x95b   :  { %v2337_v6 = vpop.f32.mrf.mxu1 }
 0x95c   :  { %1951 = vst.msk [vmem:[%s3088_s3] sm:$0xff] %vm102_vm1, %v1937_v61  ;;  %v1948_v63 = vadd.f32 %v2337_v6, %v1884_v62 }
 0x95d   :  { %v1939_v0 = vpop.f32.mrf.mxu1 }
 0x95e   :  { %1954 = vst.msk [vmem:[%s3088_s3 + $0x18] sm:$0xff] %vm102_vm1, %v1948_v63  ;;  %v1940_v1 = vadd.f32 %v1939_v0, %v1874_v55 }
 0x960   :  { %1952 = vst.msk [vmem:[%s3088_s3 + $0x8] sm:$0xff] %vm102_vm1, %v1940_v1 }

</bundles_post_ra>
